<compile_context>
chip_gen: v6e
topology: v6e:2x2x1
jax: 0.10.0
libtpu: 0.0.40
codegen_flags: <defaults>
</compile_context>

<pallas_src>
import functools
import math

import jax
import jax.numpy as jnp
from jax.experimental import pallas as pl
from jax.experimental.pallas import tpu as pltpu


def _default_vmem_limit():
    # v5e / v6e: 128 MiB physical -> 96 MiB scoped; v7x: 64 MiB -> 48 MiB.
    try:
        cap = int(pltpu.get_tpu_info().vmem_capacity_bytes)
        return min(96 * 1024 * 1024, (cap * 3) // 4)
    except Exception:
        return 48 * 1024 * 1024  # conservative; fits v7x's 64 MiB physical VMEM


VMEM_LIMIT = _default_vmem_limit()


def _tile(dim, target, align):
    """Largest multiple of `align` that divides `dim` and is <= target; else full dim."""
    if dim <= target:
        return dim
    t = (target // align) * align
    while t >= align:
        if dim % t == 0:
            return t
        t -= align
    return dim


# ----------------------------------------------------------------------------
# Kernels
# ----------------------------------------------------------------------------

def _attn_kernel(x_ref, g_ref, wqkv_ref, wo_ref, cos_ref, sin_ref, o_ref,
                 qs_ref, ks_ref, vs_ref, acc_ref, *,
                 n_heads, head_dim, scale, eps):
    # One batch row per grid step. Fused: rmsnorm -> qkv proj -> RoPE ->
    # per-head causal attention (pl.loop) -> per-head out-proj accumulate ->
    # residual add.  All weights resident in VMEM (constant index_maps).
    S = x_ref.shape[1]
    H = n_heads * head_dim
    half = head_dim // 2

    # --- rmsnorm (f32) + qkv projection (bf16 MXU, f32 accumulate) ----------
    x = x_ref[0].astype(jnp.float32)                                # (S, H)
    var = jnp.mean(x * x, axis=-1, keepdims=True)
    xn = (x * jax.lax.rsqrt(var + eps)
          * g_ref[...].astype(jnp.float32)).astype(jnp.bfloat16)
    qkv = jnp.dot(xn, wqkv_ref[...],
                  preferred_element_type=jnp.float32)               # (S, 3H) f32

    # --- RoPE once on the contiguous q||k slice (2 rolls total) -------------
    # rotate-half via circular lane rolls (XLU) + per-head-position select;
    # within-head indices never read the wrap-around values.
    cos2 = jnp.concatenate([cos_ref[...], cos_ref[...]], axis=-1)   # (S, 2H)
    sin2 = jnp.concatenate([sin_ref[...], sin_ref[...]], axis=-1)
    qk = qkv[:, :2 * H]
    lane = jax.lax.broadcasted_iota(jnp.int32, (S, 2 * H), 1)
    first_half = (lane % head_dim) < half
    fwd = pltpu.roll(qk, shift=2 * H - half, axis=1)                # qk[:, i+half]
    bwd = pltpu.roll(qk, shift=half, axis=1)                        # qk[:, i-half]
    qk = qk * cos2 + jnp.where(first_half, -fwd, bwd) * sin2
    qk = qk.astype(jnp.bfloat16)

    # --- head-major scratch layout so the head loop can index dynamically ---
    for h in range(n_heads):
        lo = h * head_dim
        qs_ref[h] = qk[:, lo:lo + head_dim]
        ks_ref[h] = qk[:, H + lo:H + lo + head_dim]
        vs_ref[h] = qkv[:, 2 * H + lo:2 * H + lo + head_dim].astype(jnp.bfloat16)
    acc_ref[...] = jnp.zeros_like(acc_ref)

    row = jax.lax.broadcasted_iota(jnp.int32, (S, S), 0)
    col = jax.lax.broadcasted_iota(jnp.int32, (S, S), 1)
    causal = col <= row

    # Per-head attention: only one (S, S) f32 score tile is live at a time and
    # the out-projection is accumulated into a resident f32 scratch.
    # TODO(synk): flash-style online softmax over KV blocks for long S.
    @pl.loop(0, n_heads)
    def _(h):
        qh = qs_ref[h]                                              # (S, hd) bf16
        kh = ks_ref[h]
        s = jax.lax.dot_general(qh, kh, (((1,), (1,)), ((), ())),
                                preferred_element_type=jnp.float32) * scale
        s = jnp.where(causal, s, jnp.float32(-1e30))
        s = s - jnp.max(s, axis=-1, keepdims=True)
        p = jnp.exp(s)
        p = p * (1.0 / jnp.sum(p, axis=-1, keepdims=True))          # exact softmax
        out_h = jnp.dot(p.astype(jnp.bfloat16), vs_ref[h],
                        preferred_element_type=jnp.float32)         # (S, hd) f32
        off = pl.multiple_of(h * head_dim, head_dim)
        wo_h = wo_ref[pl.ds(off, head_dim), :]                      # (hd, H) bf16
        acc_ref[...] += jnp.dot(out_h.astype(jnp.bfloat16), wo_h,
                                preferred_element_type=jnp.float32)

    # --- residual add, bf16 store -------------------------------------------
    o_ref[0] = (x_ref[0].astype(jnp.float32) + acc_ref[...]).astype(o_ref.dtype)


def _mlp_kernel(x_ref, g_ref, wg_ref, wu_ref, wd_ref, o_ref, *, eps):
    # Fused: rmsnorm -> gate/up proj -> SwiGLU -> down proj -> residual add.
    # All three weights are fully resident (constant index_maps); grid is only
    # over row tiles so weights stream from HBM once per layer.
    x = x_ref[...].astype(jnp.float32)
    var = jnp.mean(x * x, axis=-1, keepdims=True)
    xn = (x * jax.lax.rsqrt(var + eps)
          * g_ref[...].astype(jnp.float32)).astype(jnp.bfloat16)
    gate = jnp.dot(xn, wg_ref[...], preferred_element_type=jnp.float32)
    up = jnp.dot(xn, wu_ref[...], preferred_element_type=jnp.float32)
    h = (jax.nn.silu(gate) * up).astype(wd_ref.dtype)
    o_ref[...] = (x + jnp.dot(h, wd_ref[...],
                              preferred_element_type=jnp.float32)).astype(o_ref.dtype)


def _head_kernel(x_ref, g_ref, w_ref, logit_ref, xn_ref, xn_scr, *, eps):
    # Fused final RMSNorm + tied lm_head.  xn is computed once per row tile
    # (vocab-tile 0), cached in VMEM, reused across vocab tiles, and emitted
    # as the hidden_states output.  Logits stored in bf16 (halves writeback).
    @pl.when(pl.program_id(1) == 0)
    def _():
        x = x_ref[...].astype(jnp.float32)
        var = jnp.mean(x * x, axis=-1, keepdims=True)
        xn = x * jax.lax.rsqrt(var + eps) * g_ref[...].astype(jnp.float32)
        xn_scr[...] = xn.astype(xn_scr.dtype)
        xn_ref[...] = xn_scr[...]

    logit_ref[...] = jnp.dot(xn_scr[...], w_ref[...],
                             preferred_element_type=jnp.float32).astype(logit_ref.dtype)


# ----------------------------------------------------------------------------
# Wrappers
# ----------------------------------------------------------------------------

def attention_block(x, gamma, wqkv, wo, cos, sin, *, n_heads, scale, eps):
    B, S, H = x.shape
    hd = H // n_heads
    kernel = functools.partial(_attn_kernel, n_heads=n_heads, head_dim=hd,
                               scale=scale, eps=eps)
    return pl.pallas_call(
        kernel,
        out_shape=jax.ShapeDtypeStruct((B, S, H), jnp.bfloat16),
        grid=(B,),
        in_specs=[pl.BlockSpec((1, S, H), lambda b: (b, 0, 0)),
                  pl.BlockSpec((1, H), lambda b: (0, 0)),
                  pl.BlockSpec((H, 3 * H), lambda b: (0, 0)),   # resident
                  pl.BlockSpec((H, H), lambda b: (0, 0)),       # resident
                  pl.BlockSpec((S, H), lambda b: (0, 0)),       # resident
                  pl.BlockSpec((S, H), lambda b: (0, 0))],      # resident
        out_specs=pl.BlockSpec((1, S, H), lambda b: (b, 0, 0)),
        scratch_shapes=[pltpu.VMEM((n_heads, S, hd), jnp.bfloat16),  # q (head-major)
                        pltpu.VMEM((n_heads, S, hd), jnp.bfloat16),  # k
                        pltpu.VMEM((n_heads, S, hd), jnp.bfloat16),  # v
                        pltpu.VMEM((S, H), jnp.float32)],            # proj accum
        compiler_params=pltpu.CompilerParams(
            dimension_semantics=("parallel",),
            vmem_limit_bytes=VMEM_LIMIT),
    )(x, gamma, wqkv, wo, cos, sin)


def fused_mlp(x, gamma, wg, wu, wd, eps):
    T, H = x.shape
    I = wg.shape[1]
    tm = _tile(T, 512, 16)            # bf16 sublane packing -> 16-aligned rows
    return pl.pallas_call(
        functools.partial(_mlp_kernel, eps=eps),
        out_shape=jax.ShapeDtypeStruct((T, H), jnp.bfloat16),
        grid=(T // tm,),
        in_specs=[pl.BlockSpec((tm, H), lambda i: (i, 0)),
                  pl.BlockSpec((1, H), lambda i: (0, 0)),
                  pl.BlockSpec((H, I), lambda i: (0, 0)),       # resident
                  pl.BlockSpec((H, I), lambda i: (0, 0)),       # resident
                  pl.BlockSpec((I, H), lambda i: (0, 0))],      # resident
        out_specs=pl.BlockSpec((tm, H), lambda i: (i, 0)),
        compiler_params=pltpu.CompilerParams(
            dimension_semantics=("parallel",),
            vmem_limit_bytes=VMEM_LIMIT),
    )(x, gamma, wg, wu, wd)


def fused_head(x, gamma, w_t, eps):
    # x: (T, H); w_t: (H, V) = emb.T (transposed once per forward in XLA).
    T, H = x.shape
    V = w_t.shape[1]
    tm = _tile(T, 256, 16)
    tv = _tile(V, 2048, 128)
    kernel = functools.partial(_head_kernel, eps=eps)
    logits, xn = pl.pallas_call(
        kernel,
        out_shape=(jax.ShapeDtypeStruct((T, V), jnp.bfloat16),
                   jax.ShapeDtypeStruct((T, H), jnp.bfloat16)),
        grid=(T // tm, V // tv),                    # vocab axis inner: xn reused
        in_specs=[pl.BlockSpec((tm, H), lambda i, j: (i, 0)),
                  pl.BlockSpec((1, H), lambda i, j: (0, 0)),
                  pl.BlockSpec((H, tv), lambda i, j: (0, j))],
        out_specs=(pl.BlockSpec((tm, tv), lambda i, j: (i, j)),
                   pl.BlockSpec((tm, H), lambda i, j: (i, 0))),
        scratch_shapes=[pltpu.VMEM((tm, H), jnp.bfloat16)],
        compiler_params=pltpu.CompilerParams(
            dimension_semantics=("parallel", "arbitrary"),
            vmem_limit_bytes=VMEM_LIMIT),
    )(x, gamma, w_t)
    return logits, xn


# ----------------------------------------------------------------------------
# Parameters, RoPE tables, full forward
# ----------------------------------------------------------------------------

def init_params(key, *, vocab, hidden, inter, n_layers):
    keys = jax.random.split(key, 1 + 7 * n_layers)
    std = 0.02
    dt = jnp.bfloat16
    emb = (std * jax.random.normal(keys[0], (vocab, hidden), jnp.float32)).astype(dt)
    layers = []
    for l in range(n_layers):
        k = keys[1 + 7 * l: 1 + 7 * (l + 1)]
        wq = std * jax.random.normal(k[0], (hidden, hidden), jnp.float32)
        wk = std * jax.random.normal(k[1], (hidden, hidden), jnp.float32)
        wv = std * jax.random.normal(k[2], (hidden, hidden), jnp.float32)
        layers.append(dict(
            ln1=jnp.ones((1, hidden), jnp.float32),
            ln2=jnp.ones((1, hidden), jnp.float32),
            wqkv=jnp.concatenate([wq, wk, wv], axis=1).astype(dt),   # (H, 3H)
            wo=(std * jax.random.normal(k[3], (hidden, hidden), jnp.float32)).astype(dt),
            wg=(std * jax.random.normal(k[4], (hidden, inter), jnp.float32)).astype(dt),
            wu=(std * jax.random.normal(k[5], (hidden, inter), jnp.float32)).astype(dt),
            wd=(std * jax.random.normal(k[6], (inter, hidden), jnp.float32)).astype(dt),
        ))
    return dict(emb=emb, layers=layers, ln_f=jnp.ones((1, hidden), jnp.float32))


def rope_tables(seq_len, head_dim, n_heads, base=10000.0):
    # (S, H) per-head-tiled tables; identical per head (non-interleaved
    # rotate-half layout, matching the head-major wqkv columns).
    # TODO(synk): switch to (S, hd) tables + in-kernel broadcast if VMEM-tight.
    inv_freq = 1.0 / (base ** (jnp.arange(0, head_dim, 2, dtype=jnp.float32) / head_dim))
    t = jnp.arange(seq_len, dtype=jnp.float32)
    freqs = jnp.outer(t, inv_freq)                           # (S, hd/2)
    emb = jnp.concatenate([freqs, freqs], axis=-1)           # (S, hd)
    cos = jnp.tile(jnp.cos(emb), (1, n_heads))               # (S, H)
    sin = jnp.tile(jnp.sin(emb), (1, n_heads))
    return cos, sin


def llama_forward(params, input_ids, *, n_heads, eps):
    B, S = input_ids.shape
    emb = params["emb"]                                      # (V, H) bf16
    V, H = emb.shape
    hd = H // n_heads
    T = B * S
    scale = 1.0 / math.sqrt(hd)

    # embedding gather stays in XLA (data-dependent gather).
    x = jnp.take(emb, input_ids, axis=0).reshape(B, S, H)    # (B, S, H) bf16
    cos, sin = rope_tables(S, hd, n_heads)                   # (S, H) f32

    for layer in params["layers"]:
        # fused: rmsnorm + qkv proj + RoPE + causal MHA + out-proj + residual
        x = attention_block(x, layer["ln1"], layer["wqkv"], layer["wo"],
                            cos, sin, n_heads=n_heads, scale=scale, eps=eps)
        # fused: rmsnorm + SwiGLU MLP + residual (weights resident)
        x = fused_mlp(x.reshape(T, H), layer["ln2"], layer["wg"],
                      layer["wu"], layer["wd"], eps).reshape(B, S, H)

    # tied lm_head: transpose the embedding once (XLA) so the head kernel uses
    # a standard (H, tv) weight layout; final RMSNorm fused into the kernel.
    emb_t = emb.T                                            # (H, V) bf16
    logits, xn = fused_head(x.reshape(T, H), params["ln_f"], emb_t, eps)
    return logits.reshape(B, S, V), xn.reshape(B, S, H)


if __name__ == "__main__":
    # small config consistent with LlamaConfig semantics
    VOCAB, HIDDEN, INTER = 512, 128, 256
    N_LAYERS, N_HEADS = 2, 4
    BATCH, SEQ = 2, 8
    EPS = 1e-6

    key = jax.random.PRNGKey(0)
    pkey, ikey = jax.random.split(key)
    params = init_params(pkey, vocab=VOCAB, hidden=HIDDEN, inter=INTER,
                         n_layers=N_LAYERS)
    input_ids = jax.random.randint(ikey, (BATCH, SEQ), 0, VOCAB, dtype=jnp.int32)

    fwd = jax.jit(functools.partial(llama_forward, n_heads=N_HEADS, eps=EPS))
    logits, hidden_states = fwd(params, input_ids)
    jax.block_until_ready(logits)

    assert logits.shape == (BATCH, SEQ, VOCAB)
    assert hidden_states.shape == (BATCH, SEQ, HIDDEN)
    assert bool(jnp.all(jnp.isfinite(logits.astype(jnp.float32))))
    print("KERNEL_OK")
</pallas_src>

<mosaic_0001>
module attributes {stable_mosaic.version = 11 : i64} {
  func.func @_mlp_kernel(%arg0: i32, %arg1: memref<16x128xbf16, #tpu.memory_space<vmem>>, %arg2: memref<1x128xf32, #tpu.memory_space<vmem>>, %arg3: memref<128x256xbf16, #tpu.memory_space<vmem>>, %arg4: memref<128x256xbf16, #tpu.memory_space<vmem>>, %arg5: memref<256x128xbf16, #tpu.memory_space<vmem>>, %arg6: memref<16x128xbf16, #tpu.memory_space<vmem>>) attributes {dimension_semantics = [#tpu.dimension_semantics<parallel>], iteration_bounds = array<i64: 1>, scalar_prefetch = 0 : i64, scratch_operands = 0 : i64, tpu.core_type = #tpu.core_type<tc>, window_params = [{transform_indices = @transform_0, window_bounds = array<i64: 16, 128>}, {pipeline_mode = #tpu.pipeline_mode<synchronous>, transform_indices = @transform_1, window_bounds = array<i64: 1, 128>}, {pipeline_mode = #tpu.pipeline_mode<synchronous>, transform_indices = @transform_2, window_bounds = array<i64: 128, 256>}, {pipeline_mode = #tpu.pipeline_mode<synchronous>, transform_indices = @transform_3, window_bounds = array<i64: 128, 256>}, {pipeline_mode = #tpu.pipeline_mode<synchronous>, transform_indices = @transform_4, window_bounds = array<i64: 256, 128>}, {transform_indices = @transform_5, window_bounds = array<i64: 16, 128>}]} {
    %c0 = arith.constant 0 : index
    %c0_0 = arith.constant 0 : index
    %0 = vector.load %arg1[%c0, %c0_0] : memref<16x128xbf16, #tpu.memory_space<vmem>>, vector<16x128xbf16>
    %1 = arith.extf %0 : vector<16x128xbf16> to vector<16x128xf32>
    %2 = arith.mulf %1, %1 : vector<16x128xf32>
    %cst = arith.constant dense<0.000000e+00> : vector<16xf32>
    %3 = vector.multi_reduction <add>, %2, %cst [1] : vector<16x128xf32> to vector<16xf32>
    %4 = vector.shape_cast %3 : vector<16xf32> to vector<16x1xf32>
    %cst_1 = arith.constant 1.280000e+02 : f32
    %5 = vector.broadcast %cst_1 : f32 to vector<16x1xf32>
    %6 = arith.divf %4, %5 : vector<16x1xf32>
    %cst_2 = arith.constant 9.99999997E-7 : f32
    %7 = vector.broadcast %cst_2 : f32 to vector<16x1xf32>
    %8 = arith.addf %6, %7 : vector<16x1xf32>
    %9 = math.rsqrt %8 : vector<16x1xf32>
    %10 = vector.broadcast %9 : vector<16x1xf32> to vector<16x128xf32>
    %11 = arith.mulf %1, %10 : vector<16x128xf32>
    %c0_3 = arith.constant 0 : index
    %c0_4 = arith.constant 0 : index
    %12 = vector.load %arg2[%c0_3, %c0_4] : memref<1x128xf32, #tpu.memory_space<vmem>>, vector<1x128xf32>
    %13 = vector.broadcast %12 : vector<1x128xf32> to vector<16x128xf32>
    %14 = arith.mulf %11, %13 : vector<16x128xf32>
    %15 = arith.truncf %14 : vector<16x128xf32> to vector<16x128xbf16>
    %c0_5 = arith.constant 0 : index
    %c0_6 = arith.constant 0 : index
    %16 = vector.load %arg3[%c0_5, %c0_6] : memref<128x256xbf16, #tpu.memory_space<vmem>>, vector<128x256xbf16>
    %cst_7 = arith.constant dense<0.000000e+00> : vector<16x256xf32>
    %17 = tpu.matmul %15, %16, %cst_7 {dimension_numbers = #tpu.dot_dimension_numbers<[1], [0], [0], [1], [0, 0, 1, 1], [], []>} : vector<16x128xbf16>, vector<128x256xbf16>, vector<16x256xf32> -> vector<16x256xf32>
    %c0_8 = arith.constant 0 : index
    %c0_9 = arith.constant 0 : index
    %18 = vector.load %arg4[%c0_8, %c0_9] : memref<128x256xbf16, #tpu.memory_space<vmem>>, vector<128x256xbf16>
    %cst_10 = arith.constant dense<0.000000e+00> : vector<16x256xf32>
    %19 = tpu.matmul %15, %18, %cst_10 {dimension_numbers = #tpu.dot_dimension_numbers<[1], [0], [0], [1], [0, 0, 1, 1], [], []>} : vector<16x128xbf16>, vector<128x256xbf16>, vector<16x256xf32> -> vector<16x256xf32>
    %20 = arith.negf %17 : vector<16x256xf32>
    %21 = math.exp %20 : vector<16x256xf32>
    %cst_11 = arith.constant 1.000000e+00 : f32
    %22 = vector.broadcast %cst_11 : f32 to vector<16x256xf32>
    %23 = arith.addf %22, %21 : vector<16x256xf32>
    %24 = arith.divf %22, %23 : vector<16x256xf32>
    %25 = arith.mulf %17, %24 : vector<16x256xf32>
    %26 = arith.mulf %25, %19 : vector<16x256xf32>
    %27 = arith.truncf %26 : vector<16x256xf32> to vector<16x256xbf16>
    %c0_12 = arith.constant 0 : index
    %c0_13 = arith.constant 0 : index
    %28 = vector.load %arg5[%c0_12, %c0_13] : memref<256x128xbf16, #tpu.memory_space<vmem>>, vector<256x128xbf16>
    %cst_14 = arith.constant dense<0.000000e+00> : vector<16x128xf32>
    %29 = tpu.matmul %27, %28, %cst_14 {dimension_numbers = #tpu.dot_dimension_numbers<[1], [0], [0], [1], [0, 0, 1, 1], [], []>} : vector<16x256xbf16>, vector<256x128xbf16>, vector<16x128xf32> -> vector<16x128xf32>
    %30 = arith.addf %1, %29 : vector<16x128xf32>
    %31 = arith.truncf %30 : vector<16x128xf32> to vector<16x128xbf16>
    %c0_15 = arith.constant 0 : index
    %c0_16 = arith.constant 0 : index
    %32 = vector.load %arg6[%c0_15, %c0_16] : memref<16x128xbf16, #tpu.memory_space<vmem>>, vector<16x128xbf16>
    tpu.vector_store %arg6[%c0_15, %c0_16], %31 {strides = array<i32>} : memref<16x128xbf16, #tpu.memory_space<vmem>>, vector<16x128xbf16>,
    return
  }
  func.func @transform_0(%arg0: i32) -> (i32, i32) {
    %c0_i32 = arith.constant 0 : i32
    %c0_i32_0 = arith.constant 0 : i32
    return %arg0, %c0_i32 : i32, i32
  }
  func.func @transform_1(%arg0: i32) -> (i32, i32) {
    %c0_i32 = arith.constant 0 : i32
    %c0_i32_0 = arith.constant 0 : i32
    %c0_i32_1 = arith.constant 0 : i32
    return %c0_i32, %c0_i32_0 : i32, i32
  }
  func.func @transform_2(%arg0: i32) -> (i32, i32) {
    %c0_i32 = arith.constant 0 : i32
    %c0_i32_0 = arith.constant 0 : i32
    %c0_i32_1 = arith.constant 0 : i32
    return %c0_i32, %c0_i32_0 : i32, i32
  }
  func.func @transform_3(%arg0: i32) -> (i32, i32) {
    %c0_i32 = arith.constant 0 : i32
    %c0_i32_0 = arith.constant 0 : i32
    %c0_i32_1 = arith.constant 0 : i32
    return %c0_i32, %c0_i32_0 : i32, i32
  }
  func.func @transform_4(%arg0: i32) -> (i32, i32) {
    %c0_i32 = arith.constant 0 : i32
    %c0_i32_0 = arith.constant 0 : i32
    %c0_i32_1 = arith.constant 0 : i32
    return %c0_i32, %c0_i32_0 : i32, i32
  }
  func.func @transform_5(%arg0: i32) -> (i32, i32) {
    %c0_i32 = arith.constant 0 : i32
    %c0_i32_0 = arith.constant 0 : i32
    return %arg0, %c0_i32 : i32, i32
  }
}

module attributes {stable_mosaic.version = 11 : i64} {
  func.func @_attn_kernel(%arg0: i32, %arg1: memref<1x8x128xbf16, #tpu.memory_space<vmem>>, %arg2: memref<1x128xf32, #tpu.memory_space<vmem>>, %arg3: memref<128x384xbf16, #tpu.memory_space<vmem>>, %arg4: memref<128x128xbf16, #tpu.memory_space<vmem>>, %arg5: memref<8x128xf32, #tpu.memory_space<vmem>>, %arg6: memref<8x128xf32, #tpu.memory_space<vmem>>, %arg7: memref<1x8x128xbf16, #tpu.memory_space<vmem>>, %arg8: memref<4x8x32xbf16, #tpu.memory_space<vmem>>, %arg9: memref<4x8x32xbf16, #tpu.memory_space<vmem>>, %arg10: memref<4x8x32xbf16, #tpu.memory_space<vmem>>, %arg11: memref<8x128xf32, #tpu.memory_space<vmem>>) attributes {dimension_semantics = [#tpu.dimension_semantics<parallel>], iteration_bounds = array<i64: 2>, scalar_prefetch = 0 : i64, scratch_operands = 4 : i64, tpu.core_type = #tpu.core_type<tc>, window_params = [{transform_indices = @transform_0, window_bounds = array<i64: 1, 8, 128>}, {pipeline_mode = #tpu.pipeline_mode<synchronous>, transform_indices = @transform_1, window_bounds = array<i64: 1, 128>}, {pipeline_mode = #tpu.pipeline_mode<synchronous>, transform_indices = @transform_2, window_bounds = array<i64: 128, 384>}, {pipeline_mode = #tpu.pipeline_mode<synchronous>, transform_indices = @transform_3, window_bounds = array<i64: 128, 128>}, {pipeline_mode = #tpu.pipeline_mode<synchronous>, transform_indices = @transform_4, window_bounds = array<i64: 8, 128>}, {pipeline_mode = #tpu.pipeline_mode<synchronous>, transform_indices = @transform_5, window_bounds = array<i64: 8, 128>}, {transform_indices = @transform_6, window_bounds = array<i64: 1, 8, 128>}]} {
    %c0 = arith.constant 0 : index
    %c0_0 = arith.constant 0 : index
    %c0_1 = arith.constant 0 : index
    %0 = vector.load %arg1[%c0, %c0_0, %c0_1] : memref<1x8x128xbf16, #tpu.memory_space<vmem>>, vector<1x8x128xbf16>
    %1 = vector.shape_cast %0 : vector<1x8x128xbf16> to vector<8x128xbf16>
    %2 = arith.extf %1 : vector<8x128xbf16> to vector<8x128xf32>
    %3 = arith.mulf %2, %2 : vector<8x128xf32>
    %cst = arith.constant dense<0.000000e+00> : vector<8xf32>
    %4 = vector.multi_reduction <add>, %3, %cst [1] : vector<8x128xf32> to vector<8xf32>
    %5 = vector.shape_cast %4 : vector<8xf32> to vector<8x1xf32>
    %cst_2 = arith.constant 1.280000e+02 : f32
    %6 = vector.broadcast %cst_2 : f32 to vector<8x1xf32>
    %7 = arith.divf %5, %6 : vector<8x1xf32>
    %cst_3 = arith.constant 9.99999997E-7 : f32
    %8 = vector.broadcast %cst_3 : f32 to vector<8x1xf32>
    %9 = arith.addf %7, %8 : vector<8x1xf32>
    %10 = math.rsqrt %9 : vector<8x1xf32>
    %11 = vector.broadcast %10 : vector<8x1xf32> to vector<8x128xf32>
    %12 = arith.mulf %2, %11 : vector<8x128xf32>
    %c0_4 = arith.constant 0 : index
    %c0_5 = arith.constant 0 : index
    %13 = vector.load %arg2[%c0_4, %c0_5] : memref<1x128xf32, #tpu.memory_space<vmem>>, vector<1x128xf32>
    %14 = vector.broadcast %13 : vector<1x128xf32> to vector<8x128xf32>
    %15 = arith.mulf %12, %14 : vector<8x128xf32>
    %16 = arith.truncf %15 : vector<8x128xf32> to vector<8x128xbf16>
    %c0_6 = arith.constant 0 : index
    %c0_7 = arith.constant 0 : index
    %17 = vector.load %arg3[%c0_6, %c0_7] : memref<128x384xbf16, #tpu.memory_space<vmem>>, vector<128x384xbf16>
    %cst_8 = arith.constant dense<0.000000e+00> : vector<8x384xf32>
    %18 = tpu.matmul %16, %17, %cst_8 {dimension_numbers = #tpu.dot_dimension_numbers<[1], [0], [0], [1], [0, 0, 1, 1], [], []>} : vector<8x128xbf16>, vector<128x384xbf16>, vector<8x384xf32> -> vector<8x384xf32>
    %c0_9 = arith.constant 0 : index
    %c0_10 = arith.constant 0 : index
    %19 = vector.load %arg5[%c0_9, %c0_10] : memref<8x128xf32, #tpu.memory_space<vmem>>, vector<8x128xf32>
    %c0_11 = arith.constant 0 : index
    %c0_12 = arith.constant 0 : index
    %20 = vector.load %arg5[%c0_11, %c0_12] : memref<8x128xf32, #tpu.memory_space<vmem>>, vector<8x128xf32>
    %21 = tpu.concatenate %19, %20 in 1 : vector<8x128xf32>, vector<8x128xf32> -> vector<8x256xf32>
    %c0_13 = arith.constant 0 : index
    %c0_14 = arith.constant 0 : index
    %22 = vector.load %arg6[%c0_13, %c0_14] : memref<8x128xf32, #tpu.memory_space<vmem>>, vector<8x128xf32>
    %c0_15 = arith.constant 0 : index
    %c0_16 = arith.constant 0 : index
    %23 = vector.load %arg6[%c0_15, %c0_16] : memref<8x128xf32, #tpu.memory_space<vmem>>, vector<8x128xf32>
    %24 = tpu.concatenate %22, %23 in 1 : vector<8x128xf32>, vector<8x128xf32> -> vector<8x256xf32>
    %25 = vector.extract_strided_slice %18 {offsets = [0, 0], sizes = [8, 256], strides = [1, 1]} : vector<8x384xf32> to vector<8x256xf32>
    %26 = tpu.iota {dimensions = array<i32: 1>} : vector<8x256xi32>
    %c32_i32 = arith.constant 32 : i32
    %c0_i32 = arith.constant 0 : i32
    %27 = arith.cmpi eq, %c32_i32, %c0_i32 : i32
    %c1_i32 = arith.constant 1 : i32
    %28 = arith.select %27, %c1_i32, %c32_i32 : i32
    %29 = vector.broadcast %28 : i32 to vector<8x256xi32>
    %30 = arith.remsi %26, %29 : vector<8x256xi32>
    %c0_i32_17 = arith.constant 0 : i32
    %31 = vector.broadcast %c0_i32_17 : i32 to vector<8x256xi32>
    %32 = arith.cmpi ne, %30, %31 : vector<8x256xi32>
    %c0_i32_18 = arith.constant 0 : i32
    %33 = vector.broadcast %c0_i32_18 : i32 to vector<8x256xi32>
    %34 = arith.cmpi slt, %30, %33 : vector<8x256xi32>
    %c0_i32_19 = arith.constant 0 : i32
    %35 = arith.cmpi slt, %28, %c0_i32_19 : i32
    %36 = vector.broadcast %35 : i1 to vector<8x256xi1>
    %37 = vector.broadcast %36 : vector<8x256xi1> to vector<8x256xi1>
    %38 = arith.xori %34, %37 : vector<8x256xi1>
    %39 = arith.andi %38, %32 : vector<8x256xi1>
    %40 = vector.broadcast %28 : i32 to vector<8x256xi32>
    %41 = arith.addi %30, %40 : vector<8x256xi32>
    %42 = arith.select %39, %41, %30 : vector<8x256xi1>, vector<8x256xi32>
    %c16_i32 = arith.constant 16 : i32
    %43 = vector.broadcast %c16_i32 : i32 to vector<8x256xi32>
    %44 = arith.cmpi slt, %42, %43 : vector<8x256xi32>
    %c240_i32 = arith.constant 240 : i32
    %45 = tpu.dynamic_rotate %25 by %c240_i32 dim 1 : vector<8x256xf32>, i32 -> vector<8x256xf32>
    %c16_i32_20 = arith.constant 16 : i32
    %46 = tpu.dynamic_rotate %25 by %c16_i32_20 dim 1 : vector<8x256xf32>, i32 -> vector<8x256xf32>
    %47 = arith.mulf %25, %21 : vector<8x256xf32>
    %cst_21 = arith.constant 0.000000e+00 : f32
    %48 = vector.broadcast %cst_21 : f32 to vector<8x256xf32>
    %49 = arith.subf %48, %45 : vector<8x256xf32>
    %50 = arith.select %44, %49, %46 : vector<8x256xi1>, vector<8x256xf32>
    %51 = arith.mulf %50, %24 : vector<8x256xf32>
    %52 = arith.addf %47, %51 : vector<8x256xf32>
    %53 = arith.truncf %52 : vector<8x256xf32> to vector<8x256xbf16>
    %54 = vector.extract_strided_slice %53 {offsets = [0, 0], sizes = [8, 32], strides = [1, 1]} : vector<8x256xbf16> to vector<8x32xbf16>
    %c0_22 = arith.constant 0 : index
    %c0_23 = arith.constant 0 : index
    %c0_24 = arith.constant 0 : index
    %55 = vector.load %arg8[%c0_22, %c0_23, %c0_24] : memref<4x8x32xbf16, #tpu.memory_space<vmem>>, vector<1x8x32xbf16>
    %56 = vector.shape_cast %55 : vector<1x8x32xbf16> to vector<8x32xbf16>
    %57 = vector.shape_cast %54 : vector<8x32xbf16> to vector<1x8x32xbf16>
    tpu.vector_store %arg8[%c0_22, %c0_23, %c0_24], %57 {strides = array<i32>} : memref<4x8x32xbf16, #tpu.memory_space<vmem>>, vector<1x8x32xbf16>,
    %58 = vector.extract_strided_slice %53 {offsets = [0, 128], sizes = [8, 32], strides = [1, 1]} : vector<8x256xbf16> to vector<8x32xbf16>
    %c0_25 = arith.constant 0 : index
    %c0_26 = arith.constant 0 : index
    %c0_27 = arith.constant 0 : index
    %59 = vector.load %arg9[%c0_25, %c0_26, %c0_27] : memref<4x8x32xbf16, #tpu.memory_space<vmem>>, vector<1x8x32xbf16>
    %60 = vector.shape_cast %59 : vector<1x8x32xbf16> to vector<8x32xbf16>
    %61 = vector.shape_cast %58 : vector<8x32xbf16> to vector<1x8x32xbf16>
    tpu.vector_store %arg9[%c0_25, %c0_26, %c0_27], %61 {strides = array<i32>} : memref<4x8x32xbf16, #tpu.memory_space<vmem>>, vector<1x8x32xbf16>,
    %62 = vector.extract_strided_slice %18 {offsets = [0, 256], sizes = [8, 32], strides = [1, 1]} : vector<8x384xf32> to vector<8x32xf32>
    %63 = arith.truncf %62 : vector<8x32xf32> to vector<8x32xbf16>
    %c0_28 = arith.constant 0 : index
    %c0_29 = arith.constant 0 : index
    %c0_30 = arith.constant 0 : index
    %64 = vector.load %arg10[%c0_28, %c0_29, %c0_30] : memref<4x8x32xbf16, #tpu.memory_space<vmem>>, vector<1x8x32xbf16>
    %65 = vector.shape_cast %64 : vector<1x8x32xbf16> to vector<8x32xbf16>
    %66 = vector.shape_cast %63 : vector<8x32xbf16> to vector<1x8x32xbf16>
    tpu.vector_store %arg10[%c0_28, %c0_29, %c0_30], %66 {strides = array<i32>} : memref<4x8x32xbf16, #tpu.memory_space<vmem>>, vector<1x8x32xbf16>,
    %67 = vector.extract_strided_slice %53 {offsets = [0, 32], sizes = [8, 32], strides = [1, 1]} : vector<8x256xbf16> to vector<8x32xbf16>
    %c1 = arith.constant 1 : index
    %c0_31 = arith.constant 0 : index
    %c0_32 = arith.constant 0 : index
    %68 = vector.load %arg8[%c1, %c0_31, %c0_32] : memref<4x8x32xbf16, #tpu.memory_space<vmem>>, vector<1x8x32xbf16>
    %69 = vector.shape_cast %68 : vector<1x8x32xbf16> to vector<8x32xbf16>
    %70 = vector.shape_cast %67 : vector<8x32xbf16> to vector<1x8x32xbf16>
    tpu.vector_store %arg8[%c1, %c0_31, %c0_32], %70 {strides = array<i32>} : memref<4x8x32xbf16, #tpu.memory_space<vmem>>, vector<1x8x32xbf16>,
    %71 = vector.extract_strided_slice %53 {offsets = [0, 160], sizes = [8, 32], strides = [1, 1]} : vector<8x256xbf16> to vector<8x32xbf16>
    %c1_33 = arith.constant 1 : index
    %c0_34 = arith.constant 0 : index
    %c0_35 = arith.constant 0 : index
    %72 = vector.load %arg9[%c1_33, %c0_34, %c0_35] : memref<4x8x32xbf16, #tpu.memory_space<vmem>>, vector<1x8x32xbf16>
    %73 = vector.shape_cast %72 : vector<1x8x32xbf16> to vector<8x32xbf16>
    %74 = vector.shape_cast %71 : vector<8x32xbf16> to vector<1x8x32xbf16>
    tpu.vector_store %arg9[%c1_33, %c0_34, %c0_35], %74 {strides = array<i32>} : memref<4x8x32xbf16, #tpu.memory_space<vmem>>, vector<1x8x32xbf16>,
    %75 = vector.extract_strided_slice %18 {offsets = [0, 288], sizes = [8, 32], strides = [1, 1]} : vector<8x384xf32> to vector<8x32xf32>
    %76 = arith.truncf %75 : vector<8x32xf32> to vector<8x32xbf16>
    %c1_36 = arith.constant 1 : index
    %c0_37 = arith.constant 0 : index
    %c0_38 = arith.constant 0 : index
    %77 = vector.load %arg10[%c1_36, %c0_37, %c0_38] : memref<4x8x32xbf16, #tpu.memory_space<vmem>>, vector<1x8x32xbf16>
    %78 = vector.shape_cast %77 : vector<1x8x32xbf16> to vector<8x32xbf16>
    %79 = vector.shape_cast %76 : vector<8x32xbf16> to vector<1x8x32xbf16>
    tpu.vector_store %arg10[%c1_36, %c0_37, %c0_38], %79 {strides = array<i32>} : memref<4x8x32xbf16, #tpu.memory_space<vmem>>, vector<1x8x32xbf16>,
    %80 = vector.extract_strided_slice %53 {offsets = [0, 64], sizes = [8, 32], strides = [1, 1]} : vector<8x256xbf16> to vector<8x32xbf16>
    %c2 = arith.constant 2 : index
    %c0_39 = arith.constant 0 : index
    %c0_40 = arith.constant 0 : index
    %81 = vector.load %arg8[%c2, %c0_39, %c0_40] : memref<4x8x32xbf16, #tpu.memory_space<vmem>>, vector<1x8x32xbf16>
    %82 = vector.shape_cast %81 : vector<1x8x32xbf16> to vector<8x32xbf16>
    %83 = vector.shape_cast %80 : vector<8x32xbf16> to vector<1x8x32xbf16>
    tpu.vector_store %arg8[%c2, %c0_39, %c0_40], %83 {strides = array<i32>} : memref<4x8x32xbf16, #tpu.memory_space<vmem>>, vector<1x8x32xbf16>,
    %84 = vector.extract_strided_slice %53 {offsets = [0, 192], sizes = [8, 32], strides = [1, 1]} : vector<8x256xbf16> to vector<8x32xbf16>
    %c2_41 = arith.constant 2 : index
    %c0_42 = arith.constant 0 : index
    %c0_43 = arith.constant 0 : index
    %85 = vector.load %arg9[%c2_41, %c0_42, %c0_43] : memref<4x8x32xbf16, #tpu.memory_space<vmem>>, vector<1x8x32xbf16>
    %86 = vector.shape_cast %85 : vector<1x8x32xbf16> to vector<8x32xbf16>
    %87 = vector.shape_cast %84 : vector<8x32xbf16> to vector<1x8x32xbf16>
    tpu.vector_store %arg9[%c2_41, %c0_42, %c0_43], %87 {strides = array<i32>} : memref<4x8x32xbf16, #tpu.memory_space<vmem>>, vector<1x8x32xbf16>,
    %88 = vector.extract_strided_slice %18 {offsets = [0, 320], sizes = [8, 32], strides = [1, 1]} : vector<8x384xf32> to vector<8x32xf32>
    %89 = arith.truncf %88 : vector<8x32xf32> to vector<8x32xbf16>
    %c2_44 = arith.constant 2 : index
    %c0_45 = arith.constant 0 : index
    %c0_46 = arith.constant 0 : index
    %90 = vector.load %arg10[%c2_44, %c0_45, %c0_46] : memref<4x8x32xbf16, #tpu.memory_space<vmem>>, vector<1x8x32xbf16>
    %91 = vector.shape_cast %90 : vector<1x8x32xbf16> to vector<8x32xbf16>
    %92 = vector.shape_cast %89 : vector<8x32xbf16> to vector<1x8x32xbf16>
    tpu.vector_store %arg10[%c2_44, %c0_45, %c0_46], %92 {strides = array<i32>} : memref<4x8x32xbf16, #tpu.memory_space<vmem>>, vector<1x8x32xbf16>,
    %93 = vector.extract_strided_slice %53 {offsets = [0, 96], sizes = [8, 32], strides = [1, 1]} : vector<8x256xbf16> to vector<8x32xbf16>
    %c3 = arith.constant 3 : index
    %c0_47 = arith.constant 0 : index
    %c0_48 = arith.constant 0 : index
    %94 = vector.load %arg8[%c3, %c0_47, %c0_48] : memref<4x8x32xbf16, #tpu.memory_space<vmem>>, vector<1x8x32xbf16>
    %95 = vector.shape_cast %94 : vector<1x8x32xbf16> to vector<8x32xbf16>
    %96 = vector.shape_cast %93 : vector<8x32xbf16> to vector<1x8x32xbf16>
    tpu.vector_store %arg8[%c3, %c0_47, %c0_48], %96 {strides = array<i32>} : memref<4x8x32xbf16, #tpu.memory_space<vmem>>, vector<1x8x32xbf16>,
    %97 = vector.extract_strided_slice %53 {offsets = [0, 224], sizes = [8, 32], strides = [1, 1]} : vector<8x256xbf16> to vector<8x32xbf16>
    %c3_49 = arith.constant 3 : index
    %c0_50 = arith.constant 0 : index
    %c0_51 = arith.constant 0 : index
    %98 = vector.load %arg9[%c3_49, %c0_50, %c0_51] : memref<4x8x32xbf16, #tpu.memory_space<vmem>>, vector<1x8x32xbf16>
    %99 = vector.shape_cast %98 : vector<1x8x32xbf16> to vector<8x32xbf16>
    %100 = vector.shape_cast %97 : vector<8x32xbf16> to vector<1x8x32xbf16>
    tpu.vector_store %arg9[%c3_49, %c0_50, %c0_51], %100 {strides = array<i32>} : memref<4x8x32xbf16, #tpu.memory_space<vmem>>, vector<1x8x32xbf16>,
    %101 = vector.extract_strided_slice %18 {offsets = [0, 352], sizes = [8, 32], strides = [1, 1]} : vector<8x384xf32> to vector<8x32xf32>
    %102 = arith.truncf %101 : vector<8x32xf32> to vector<8x32xbf16>
    %c3_52 = arith.constant 3 : index
    %c0_53 = arith.constant 0 : index
    %c0_54 = arith.constant 0 : index
    %103 = vector.load %arg10[%c3_52, %c0_53, %c0_54] : memref<4x8x32xbf16, #tpu.memory_space<vmem>>, vector<1x8x32xbf16>
    %104 = vector.shape_cast %103 : vector<1x8x32xbf16> to vector<8x32xbf16>
    %105 = vector.shape_cast %102 : vector<8x32xbf16> to vector<1x8x32xbf16>
    tpu.vector_store %arg10[%c3_52, %c0_53, %c0_54], %105 {strides = array<i32>} : memref<4x8x32xbf16, #tpu.memory_space<vmem>>, vector<1x8x32xbf16>,
    %cst_55 = arith.constant 0.000000e+00 : f32
    %106 = vector.broadcast %cst_55 : f32 to vector<8x128xf32>
    %c0_56 = arith.constant 0 : index
    %c0_57 = arith.constant 0 : index
    %107 = vector.load %arg11[%c0_56, %c0_57] : memref<8x128xf32, #tpu.memory_space<vmem>>, vector<8x128xf32>
    tpu.vector_store %arg11[%c0_56, %c0_57], %106 {strides = array<i32>} : memref<8x128xf32, #tpu.memory_space<vmem>>, vector<8x128xf32>,
    %108 = tpu.iota {dimensions = array<i32: 0>} : vector<8x8xi32>
    %109 = tpu.iota {dimensions = array<i32: 1>} : vector<8x8xi32>
    %110 = arith.cmpi sle, %109, %108 : vector<8x8xi32>
    %c0_i32_58 = arith.constant 0 : i32
    %c4_i32 = arith.constant 4 : i32
    %111 = arith.addi %c0_i32_58, %c4_i32 : i32
    %c1_i32_59 = arith.constant 1 : i32
    scf.for %arg12 = %c0_i32_58 to %111 step %c1_i32_59  : i32 {
      %c1_i32_69 = arith.constant 1 : i32
      %121 = arith.muli %arg12, %c1_i32_69 : i32
      %c0_i32_70 = arith.constant 0 : i32
      %122 = arith.addi %c0_i32_70, %121 : i32
      %123 = arith.index_cast %122 : i32 to index
      %c0_71 = arith.constant 0 : index
      %c0_72 = arith.constant 0 : index
      %124 = vector.load %arg8[%123, %c0_71, %c0_72] : memref<4x8x32xbf16, #tpu.memory_space<vmem>>, vector<1x8x32xbf16>
      %125 = vector.shape_cast %124 : vector<1x8x32xbf16> to vector<8x32xbf16>
      %126 = arith.index_cast %122 : i32 to index
      %c0_73 = arith.constant 0 : index
      %c0_74 = arith.constant 0 : index
      %127 = vector.load %arg9[%126, %c0_73, %c0_74] : memref<4x8x32xbf16, #tpu.memory_space<vmem>>, vector<1x8x32xbf16>
      %128 = vector.shape_cast %127 : vector<1x8x32xbf16> to vector<8x32xbf16>
      %cst_75 = arith.constant dense<0.000000e+00> : vector<8x8xf32>
      %129 = tpu.matmul %125, %128, %cst_75 {dimension_numbers = #tpu.dot_dimension_numbers<[1], [1], [0], [0], [0, 0, 1, 0], [], []>} : vector<8x32xbf16>, vector<8x32xbf16>, vector<8x8xf32> -> vector<8x8xf32>
      %cst_76 = arith.constant 0.176776692 : f32
      %130 = vector.broadcast %cst_76 : f32 to vector<8x8xf32>
      %131 = arith.mulf %129, %130 : vector<8x8xf32>
      %cst_77 = arith.constant -1.000000e+30 : f32
      %132 = vector.broadcast %cst_77 : f32 to vector<8x8xf32>
      %133 = arith.select %110, %131, %132 : vector<8x8xi1>, vector<8x8xf32>
      %cst_78 = arith.constant dense<0xFF800000> : vector<8xf32>
      %134 = vector.multi_reduction <maximumf>, %133, %cst_78 [1] : vector<8x8xf32> to vector<8xf32>
      %135 = vector.shape_cast %134 : vector<8xf32> to vector<8x1xf32>
      %136 = vector.broadcast %135 : vector<8x1xf32> to vector<8x8xf32>
      %137 = arith.subf %133, %136 : vector<8x8xf32>
      %138 = math.exp %137 : vector<8x8xf32>
      %cst_79 = arith.constant dense<0.000000e+00> : vector<8xf32>
      %139 = vector.multi_reduction <add>, %138, %cst_79 [1] : vector<8x8xf32> to vector<8xf32>
      %140 = vector.shape_cast %139 : vector<8xf32> to vector<8x1xf32>
      %cst_80 = arith.constant 1.000000e+00 : f32
      %141 = vector.broadcast %cst_80 : f32 to vector<8x1xf32>
      %142 = arith.divf %141, %140 : vector<8x1xf32>
      %143 = vector.broadcast %142 : vector<8x1xf32> to vector<8x8xf32>
      %144 = arith.mulf %138, %143 : vector<8x8xf32>
      %145 = arith.truncf %144 : vector<8x8xf32> to vector<8x8xbf16>
      %146 = arith.index_cast %122 : i32 to index
      %c0_81 = arith.constant 0 : index
      %c0_82 = arith.constant 0 : index
      %147 = vector.load %arg10[%146, %c0_81, %c0_82] : memref<4x8x32xbf16, #tpu.memory_space<vmem>>, vector<1x8x32xbf16>
      %148 = vector.shape_cast %147 : vector<1x8x32xbf16> to vector<8x32xbf16>
      %cst_83 = arith.constant dense<0.000000e+00> : vector<8x32xf32>
      %149 = tpu.matmul %145, %148, %cst_83 {dimension_numbers = #tpu.dot_dimension_numbers<[1], [0], [0], [1], [0, 0, 1, 1], [], []>} : vector<8x8xbf16>, vector<8x32xbf16>, vector<8x32xf32> -> vector<8x32xf32>
      %c32_i32_84 = arith.constant 32 : i32
      %150 = arith.muli %122, %c32_i32_84 : i32
      %151 = tpu.assume_multiple %150, 32 : i32
      %152 = arith.index_cast %151 : i32 to index
      %c0_85 = arith.constant 0 : index
      %153 = vector.load %arg4[%152, %c0_85] : memref<128x128xbf16, #tpu.memory_space<vmem>>, vector<32x128xbf16>
      %c0_86 = arith.constant 0 : index
      %c0_87 = arith.constant 0 : index
      %154 = vector.load %arg11[%c0_86, %c0_87] : memref<8x128xf32, #tpu.memory_space<vmem>>, vector<8x128xf32>
      %155 = arith.truncf %149 : vector<8x32xf32> to vector<8x32xbf16>
      %cst_88 = arith.constant dense<0.000000e+00> : vector<8x128xf32>
      %156 = tpu.matmul %155, %153, %cst_88 {dimension_numbers = #tpu.dot_dimension_numbers<[1], [0], [0], [1], [0, 0, 1, 1], [], []>} : vector<8x32xbf16>, vector<32x128xbf16>, vector<8x128xf32> -> vector<8x128xf32>
      %157 = arith.addf %154, %156 : vector<8x128xf32>
      %c0_89 = arith.constant 0 : index
      %c0_90 = arith.constant 0 : index
      %158 = vector.load %arg11[%c0_89, %c0_90] : memref<8x128xf32, #tpu.memory_space<vmem>>, vector<8x128xf32>
      tpu.vector_store %arg11[%c0_89, %c0_90], %157 {strides = array<i32>} : memref<8x128xf32, #tpu.memory_space<vmem>>, vector<8x128xf32>,
    }
    %c4_i32_60 = arith.constant 4 : i32
    %c0_61 = arith.constant 0 : index
    %c0_62 = arith.constant 0 : index
    %c0_63 = arith.constant 0 : index
    %112 = vector.load %arg1[%c0_61, %c0_62, %c0_63] : memref<1x8x128xbf16, #tpu.memory_space<vmem>>, vector<1x8x128xbf16>
    %113 = vector.shape_cast %112 : vector<1x8x128xbf16> to vector<8x128xbf16>
    %114 = arith.extf %113 : vector<8x128xbf16> to vector<8x128xf32>
    %c0_64 = arith.constant 0 : index
    %c0_65 = arith.constant 0 : index
    %115 = vector.load %arg11[%c0_64, %c0_65] : memref<8x128xf32, #tpu.memory_space<vmem>>, vector<8x128xf32>
    %116 = arith.addf %114, %115 : vector<8x128xf32>
    %117 = arith.truncf %116 : vector<8x128xf32> to vector<8x128xbf16>
    %c0_66 = arith.constant 0 : index
    %c0_67 = arith.constant 0 : index
    %c0_68 = arith.constant 0 : index
    %118 = vector.load %arg7[%c0_66, %c0_67, %c0_68] : memref<1x8x128xbf16, #tpu.memory_space<vmem>>, vector<1x8x128xbf16>
    %119 = vector.shape_cast %118 : vector<1x8x128xbf16> to vector<8x128xbf16>
    %120 = vector.shape_cast %117 : vector<8x128xbf16> to vector<1x8x128xbf16>
    tpu.vector_store %arg7[%c0_66, %c0_67, %c0_68], %120 {strides = array<i32>} : memref<1x8x128xbf16, #tpu.memory_space<vmem>>, vector<1x8x128xbf16>,
    return
  }
  func.func @transform_0(%arg0: i32) -> (i32, i32, i32) {
    %c0_i32 = arith.constant 0 : i32
    %c0_i32_0 = arith.constant 0 : i32
    %c0_i32_1 = arith.constant 0 : i32
    return %arg0, %c0_i32, %c0_i32_0 : i32, i32, i32
  }
  func.func @transform_1(%arg0: i32) -> (i32, i32) {
    %c0_i32 = arith.constant 0 : i32
    %c0_i32_0 = arith.constant 0 : i32
    %c0_i32_1 = arith.constant 0 : i32
    return %c0_i32, %c0_i32_0 : i32, i32
  }
  func.func @transform_2(%arg0: i32) -> (i32, i32) {
    %c0_i32 = arith.constant 0 : i32
    %c0_i32_0 = arith.constant 0 : i32
    %c0_i32_1 = arith.constant 0 : i32
    return %c0_i32, %c0_i32_0 : i32, i32
  }
  func.func @transform_3(%arg0: i32) -> (i32, i32) {
    %c0_i32 = arith.constant 0 : i32
    %c0_i32_0 = arith.constant 0 : i32
    %c0_i32_1 = arith.constant 0 : i32
    return %c0_i32, %c0_i32_0 : i32, i32
  }
  func.func @transform_4(%arg0: i32) -> (i32, i32) {
    %c0_i32 = arith.constant 0 : i32
    %c0_i32_0 = arith.constant 0 : i32
    %c0_i32_1 = arith.constant 0 : i32
    return %c0_i32, %c0_i32_0 : i32, i32
  }
  func.func @transform_5(%arg0: i32) -> (i32, i32) {
    %c0_i32 = arith.constant 0 : i32
    %c0_i32_0 = arith.constant 0 : i32
    %c0_i32_1 = arith.constant 0 : i32
    return %c0_i32, %c0_i32_0 : i32, i32
  }
  func.func @transform_6(%arg0: i32) -> (i32, i32, i32) {
    %c0_i32 = arith.constant 0 : i32
    %c0_i32_0 = arith.constant 0 : i32
    %c0_i32_1 = arith.constant 0 : i32
    return %arg0, %c0_i32, %c0_i32_0 : i32, i32, i32
  }
}

module attributes {stable_mosaic.version = 11 : i64} {
  func.func @_attn_kernel(%arg0: i32, %arg1: memref<1x8x128xbf16, #tpu.memory_space<vmem>>, %arg2: memref<1x128xf32, #tpu.memory_space<vmem>>, %arg3: memref<128x384xbf16, #tpu.memory_space<vmem>>, %arg4: memref<128x128xbf16, #tpu.memory_space<vmem>>, %arg5: memref<8x128xf32, #tpu.memory_space<vmem>>, %arg6: memref<8x128xf32, #tpu.memory_space<vmem>>, %arg7: memref<1x8x128xbf16, #tpu.memory_space<vmem>>, %arg8: memref<4x8x32xbf16, #tpu.memory_space<vmem>>, %arg9: memref<4x8x32xbf16, #tpu.memory_space<vmem>>, %arg10: memref<4x8x32xbf16, #tpu.memory_space<vmem>>, %arg11: memref<8x128xf32, #tpu.memory_space<vmem>>) attributes {dimension_semantics = [#tpu.dimension_semantics<parallel>], iteration_bounds = array<i64: 2>, scalar_prefetch = 0 : i64, scratch_operands = 4 : i64, tpu.core_type = #tpu.core_type<tc>, window_params = [{transform_indices = @transform_0, window_bounds = array<i64: 1, 8, 128>}, {pipeline_mode = #tpu.pipeline_mode<synchronous>, transform_indices = @transform_1, window_bounds = array<i64: 1, 128>}, {pipeline_mode = #tpu.pipeline_mode<synchronous>, transform_indices = @transform_2, window_bounds = array<i64: 128, 384>}, {pipeline_mode = #tpu.pipeline_mode<synchronous>, transform_indices = @transform_3, window_bounds = array<i64: 128, 128>}, {pipeline_mode = #tpu.pipeline_mode<synchronous>, transform_indices = @transform_4, window_bounds = array<i64: 8, 128>}, {pipeline_mode = #tpu.pipeline_mode<synchronous>, transform_indices = @transform_5, window_bounds = array<i64: 8, 128>}, {transform_indices = @transform_6, window_bounds = array<i64: 1, 8, 128>}]} {
    %c0 = arith.constant 0 : index
    %c0_0 = arith.constant 0 : index
    %c0_1 = arith.constant 0 : index
    %0 = vector.load %arg1[%c0, %c0_0, %c0_1] : memref<1x8x128xbf16, #tpu.memory_space<vmem>>, vector<1x8x128xbf16>
    %1 = vector.shape_cast %0 : vector<1x8x128xbf16> to vector<8x128xbf16>
    %2 = arith.extf %1 : vector<8x128xbf16> to vector<8x128xf32>
    %3 = arith.mulf %2, %2 : vector<8x128xf32>
    %cst = arith.constant dense<0.000000e+00> : vector<8xf32>
    %4 = vector.multi_reduction <add>, %3, %cst [1] : vector<8x128xf32> to vector<8xf32>
    %5 = vector.shape_cast %4 : vector<8xf32> to vector<8x1xf32>
    %cst_2 = arith.constant 1.280000e+02 : f32
    %6 = vector.broadcast %cst_2 : f32 to vector<8x1xf32>
    %7 = arith.divf %5, %6 : vector<8x1xf32>
    %cst_3 = arith.constant 9.99999997E-7 : f32
    %8 = vector.broadcast %cst_3 : f32 to vector<8x1xf32>
    %9 = arith.addf %7, %8 : vector<8x1xf32>
    %10 = math.rsqrt %9 : vector<8x1xf32>
    %11 = vector.broadcast %10 : vector<8x1xf32> to vector<8x128xf32>
    %12 = arith.mulf %2, %11 : vector<8x128xf32>
    %c0_4 = arith.constant 0 : index
    %c0_5 = arith.constant 0 : index
    %13 = vector.load %arg2[%c0_4, %c0_5] : memref<1x128xf32, #tpu.memory_space<vmem>>, vector<1x128xf32>
    %14 = vector.broadcast %13 : vector<1x128xf32> to vector<8x128xf32>
    %15 = arith.mulf %12, %14 : vector<8x128xf32>
    %16 = arith.truncf %15 : vector<8x128xf32> to vector<8x128xbf16>
    %c0_6 = arith.constant 0 : index
    %c0_7 = arith.constant 0 : index
    %17 = vector.load %arg3[%c0_6, %c0_7] : memref<128x384xbf16, #tpu.memory_space<vmem>>, vector<128x384xbf16>
    %cst_8 = arith.constant dense<0.000000e+00> : vector<8x384xf32>
    %18 = tpu.matmul %16, %17, %cst_8 {dimension_numbers = #tpu.dot_dimension_numbers<[1], [0], [0], [1], [0, 0, 1, 1], [], []>} : vector<8x128xbf16>, vector<128x384xbf16>, vector<8x384xf32> -> vector<8x384xf32>
    %c0_9 = arith.constant 0 : index
    %c0_10 = arith.constant 0 : index
    %19 = vector.load %arg5[%c0_9, %c0_10] : memref<8x128xf32, #tpu.memory_space<vmem>>, vector<8x128xf32>
    %c0_11 = arith.constant 0 : index
    %c0_12 = arith.constant 0 : index
    %20 = vector.load %arg5[%c0_11, %c0_12] : memref<8x128xf32, #tpu.memory_space<vmem>>, vector<8x128xf32>
    %21 = tpu.concatenate %19, %20 in 1 : vector<8x128xf32>, vector<8x128xf32> -> vector<8x256xf32>
    %c0_13 = arith.constant 0 : index
    %c0_14 = arith.constant 0 : index
    %22 = vector.load %arg6[%c0_13, %c0_14] : memref<8x128xf32, #tpu.memory_space<vmem>>, vector<8x128xf32>
    %c0_15 = arith.constant 0 : index
    %c0_16 = arith.constant 0 : index
    %23 = vector.load %arg6[%c0_15, %c0_16] : memref<8x128xf32, #tpu.memory_space<vmem>>, vector<8x128xf32>
    %24 = tpu.concatenate %22, %23 in 1 : vector<8x128xf32>, vector<8x128xf32> -> vector<8x256xf32>
    %25 = vector.extract_strided_slice %18 {offsets = [0, 0], sizes = [8, 256], strides = [1, 1]} : vector<8x384xf32> to vector<8x256xf32>
    %26 = tpu.iota {dimensions = array<i32: 1>} : vector<8x256xi32>
    %c32_i32 = arith.constant 32 : i32
    %c0_i32 = arith.constant 0 : i32
    %27 = arith.cmpi eq, %c32_i32, %c0_i32 : i32
    %c1_i32 = arith.constant 1 : i32
    %28 = arith.select %27, %c1_i32, %c32_i32 : i32
    %29 = vector.broadcast %28 : i32 to vector<8x256xi32>
    %30 = arith.remsi %26, %29 : vector<8x256xi32>
    %c0_i32_17 = arith.constant 0 : i32
    %31 = vector.broadcast %c0_i32_17 : i32 to vector<8x256xi32>
    %32 = arith.cmpi ne, %30, %31 : vector<8x256xi32>
    %c0_i32_18 = arith.constant 0 : i32
    %33 = vector.broadcast %c0_i32_18 : i32 to vector<8x256xi32>
    %34 = arith.cmpi slt, %30, %33 : vector<8x256xi32>
    %c0_i32_19 = arith.constant 0 : i32
    %35 = arith.cmpi slt, %28, %c0_i32_19 : i32
    %36 = vector.broadcast %35 : i1 to vector<8x256xi1>
    %37 = vector.broadcast %36 : vector<8x256xi1> to vector<8x256xi1>
    %38 = arith.xori %34, %37 : vector<8x256xi1>
    %39 = arith.andi %38, %32 : vector<8x256xi1>
    %40 = vector.broadcast %28 : i32 to vector<8x256xi32>
    %41 = arith.addi %30, %40 : vector<8x256xi32>
    %42 = arith.select %39, %41, %30 : vector<8x256xi1>, vector<8x256xi32>
    %c16_i32 = arith.constant 16 : i32
    %43 = vector.broadcast %c16_i32 : i32 to vector<8x256xi32>
    %44 = arith.cmpi slt, %42, %43 : vector<8x256xi32>
    %c240_i32 = arith.constant 240 : i32
    %45 = tpu.dynamic_rotate %25 by %c240_i32 dim 1 : vector<8x256xf32>, i32 -> vector<8x256xf32>
    %c16_i32_20 = arith.constant 16 : i32
    %46 = tpu.dynamic_rotate %25 by %c16_i32_20 dim 1 : vector<8x256xf32>, i32 -> vector<8x256xf32>
    %47 = arith.mulf %25, %21 : vector<8x256xf32>
    %cst_21 = arith.constant 0.000000e+00 : f32
    %48 = vector.broadcast %cst_21 : f32 to vector<8x256xf32>
    %49 = arith.subf %48, %45 : vector<8x256xf32>
    %50 = arith.select %44, %49, %46 : vector<8x256xi1>, vector<8x256xf32>
    %51 = arith.mulf %50, %24 : vector<8x256xf32>
    %52 = arith.addf %47, %51 : vector<8x256xf32>
    %53 = arith.truncf %52 : vector<8x256xf32> to vector<8x256xbf16>
    %54 = vector.extract_strided_slice %53 {offsets = [0, 0], sizes = [8, 32], strides = [1, 1]} : vector<8x256xbf16> to vector<8x32xbf16>
    %c0_22 = arith.constant 0 : index
    %c0_23 = arith.constant 0 : index
    %c0_24 = arith.constant 0 : index
    %55 = vector.load %arg8[%c0_22, %c0_23, %c0_24] : memref<4x8x32xbf16, #tpu.memory_space<vmem>>, vector<1x8x32xbf16>
    %56 = vector.shape_cast %55 : vector<1x8x32xbf16> to vector<8x32xbf16>
    %57 = vector.shape_cast %54 : vector<8x32xbf16> to vector<1x8x32xbf16>
    tpu.vector_store %arg8[%c0_22, %c0_23, %c0_24], %57 {strides = array<i32>} : memref<4x8x32xbf16, #tpu.memory_space<vmem>>, vector<1x8x32xbf16>,
    %58 = vector.extract_strided_slice %53 {offsets = [0, 128], sizes = [8, 32], strides = [1, 1]} : vector<8x256xbf16> to vector<8x32xbf16>
    %c0_25 = arith.constant 0 : index
    %c0_26 = arith.constant 0 : index
    %c0_27 = arith.constant 0 : index
    %59 = vector.load %arg9[%c0_25, %c0_26, %c0_27] : memref<4x8x32xbf16, #tpu.memory_space<vmem>>, vector<1x8x32xbf16>
    %60 = vector.shape_cast %59 : vector<1x8x32xbf16> to vector<8x32xbf16>
    %61 = vector.shape_cast %58 : vector<8x32xbf16> to vector<1x8x32xbf16>
    tpu.vector_store %arg9[%c0_25, %c0_26, %c0_27], %61 {strides = array<i32>} : memref<4x8x32xbf16, #tpu.memory_space<vmem>>, vector<1x8x32xbf16>,
    %62 = vector.extract_strided_slice %18 {offsets = [0, 256], sizes = [8, 32], strides = [1, 1]} : vector<8x384xf32> to vector<8x32xf32>
    %63 = arith.truncf %62 : vector<8x32xf32> to vector<8x32xbf16>
    %c0_28 = arith.constant 0 : index
    %c0_29 = arith.constant 0 : index
    %c0_30 = arith.constant 0 : index
    %64 = vector.load %arg10[%c0_28, %c0_29, %c0_30] : memref<4x8x32xbf16, #tpu.memory_space<vmem>>, vector<1x8x32xbf16>
    %65 = vector.shape_cast %64 : vector<1x8x32xbf16> to vector<8x32xbf16>
    %66 = vector.shape_cast %63 : vector<8x32xbf16> to vector<1x8x32xbf16>
    tpu.vector_store %arg10[%c0_28, %c0_29, %c0_30], %66 {strides = array<i32>} : memref<4x8x32xbf16, #tpu.memory_space<vmem>>, vector<1x8x32xbf16>,
    %67 = vector.extract_strided_slice %53 {offsets = [0, 32], sizes = [8, 32], strides = [1, 1]} : vector<8x256xbf16> to vector<8x32xbf16>
    %c1 = arith.constant 1 : index
    %c0_31 = arith.constant 0 : index
    %c0_32 = arith.constant 0 : index
    %68 = vector.load %arg8[%c1, %c0_31, %c0_32] : memref<4x8x32xbf16, #tpu.memory_space<vmem>>, vector<1x8x32xbf16>
    %69 = vector.shape_cast %68 : vector<1x8x32xbf16> to vector<8x32xbf16>
    %70 = vector.shape_cast %67 : vector<8x32xbf16> to vector<1x8x32xbf16>
    tpu.vector_store %arg8[%c1, %c0_31, %c0_32], %70 {strides = array<i32>} : memref<4x8x32xbf16, #tpu.memory_space<vmem>>, vector<1x8x32xbf16>,
    %71 = vector.extract_strided_slice %53 {offsets = [0, 160], sizes = [8, 32], strides = [1, 1]} : vector<8x256xbf16> to vector<8x32xbf16>
    %c1_33 = arith.constant 1 : index
    %c0_34 = arith.constant 0 : index
    %c0_35 = arith.constant 0 : index
    %72 = vector.load %arg9[%c1_33, %c0_34, %c0_35] : memref<4x8x32xbf16, #tpu.memory_space<vmem>>, vector<1x8x32xbf16>
    %73 = vector.shape_cast %72 : vector<1x8x32xbf16> to vector<8x32xbf16>
    %74 = vector.shape_cast %71 : vector<8x32xbf16> to vector<1x8x32xbf16>
    tpu.vector_store %arg9[%c1_33, %c0_34, %c0_35], %74 {strides = array<i32>} : memref<4x8x32xbf16, #tpu.memory_space<vmem>>, vector<1x8x32xbf16>,
    %75 = vector.extract_strided_slice %18 {offsets = [0, 288], sizes = [8, 32], strides = [1, 1]} : vector<8x384xf32> to vector<8x32xf32>
    %76 = arith.truncf %75 : vector<8x32xf32> to vector<8x32xbf16>
    %c1_36 = arith.constant 1 : index
    %c0_37 = arith.constant 0 : index
    %c0_38 = arith.constant 0 : index
    %77 = vector.load %arg10[%c1_36, %c0_37, %c0_38] : memref<4x8x32xbf16, #tpu.memory_space<vmem>>, vector<1x8x32xbf16>
    %78 = vector.shape_cast %77 : vector<1x8x32xbf16> to vector<8x32xbf16>
    %79 = vector.shape_cast %76 : vector<8x32xbf16> to vector<1x8x32xbf16>
    tpu.vector_store %arg10[%c1_36, %c0_37, %c0_38], %79 {strides = array<i32>} : memref<4x8x32xbf16, #tpu.memory_space<vmem>>, vector<1x8x32xbf16>,
    %80 = vector.extract_strided_slice %53 {offsets = [0, 64], sizes = [8, 32], strides = [1, 1]} : vector<8x256xbf16> to vector<8x32xbf16>
    %c2 = arith.constant 2 : index
    %c0_39 = arith.constant 0 : index
    %c0_40 = arith.constant 0 : index
    %81 = vector.load %arg8[%c2, %c0_39, %c0_40] : memref<4x8x32xbf16, #tpu.memory_space<vmem>>, vector<1x8x32xbf16>
    %82 = vector.shape_cast %81 : vector<1x8x32xbf16> to vector<8x32xbf16>
    %83 = vector.shape_cast %80 : vector<8x32xbf16> to vector<1x8x32xbf16>
    tpu.vector_store %arg8[%c2, %c0_39, %c0_40], %83 {strides = array<i32>} : memref<4x8x32xbf16, #tpu.memory_space<vmem>>, vector<1x8x32xbf16>,
    %84 = vector.extract_strided_slice %53 {offsets = [0, 192], sizes = [8, 32], strides = [1, 1]} : vector<8x256xbf16> to vector<8x32xbf16>
    %c2_41 = arith.constant 2 : index
    %c0_42 = arith.constant 0 : index
    %c0_43 = arith.constant 0 : index
    %85 = vector.load %arg9[%c2_41, %c0_42, %c0_43] : memref<4x8x32xbf16, #tpu.memory_space<vmem>>, vector<1x8x32xbf16>
    %86 = vector.shape_cast %85 : vector<1x8x32xbf16> to vector<8x32xbf16>
    %87 = vector.shape_cast %84 : vector<8x32xbf16> to vector<1x8x32xbf16>
    tpu.vector_store %arg9[%c2_41, %c0_42, %c0_43], %87 {strides = array<i32>} : memref<4x8x32xbf16, #tpu.memory_space<vmem>>, vector<1x8x32xbf16>,
    %88 = vector.extract_strided_slice %18 {offsets = [0, 320], sizes = [8, 32], strides = [1, 1]} : vector<8x384xf32> to vector<8x32xf32>
    %89 = arith.truncf %88 : vector<8x32xf32> to vector<8x32xbf16>
    %c2_44 = arith.constant 2 : index
    %c0_45 = arith.constant 0 : index
    %c0_46 = arith.constant 0 : index
    %90 = vector.load %arg10[%c2_44, %c0_45, %c0_46] : memref<4x8x32xbf16, #tpu.memory_space<vmem>>, vector<1x8x32xbf16>
    %91 = vector.shape_cast %90 : vector<1x8x32xbf16> to vector<8x32xbf16>
    %92 = vector.shape_cast %89 : vector<8x32xbf16> to vector<1x8x32xbf16>
    tpu.vector_store %arg10[%c2_44, %c0_45, %c0_46], %92 {strides = array<i32>} : memref<4x8x32xbf16, #tpu.memory_space<vmem>>, vector<1x8x32xbf16>,
    %93 = vector.extract_strided_slice %53 {offsets = [0, 96], sizes = [8, 32], strides = [1, 1]} : vector<8x256xbf16> to vector<8x32xbf16>
    %c3 = arith.constant 3 : index
    %c0_47 = arith.constant 0 : index
    %c0_48 = arith.constant 0 : index
    %94 = vector.load %arg8[%c3, %c0_47, %c0_48] : memref<4x8x32xbf16, #tpu.memory_space<vmem>>, vector<1x8x32xbf16>
    %95 = vector.shape_cast %94 : vector<1x8x32xbf16> to vector<8x32xbf16>
    %96 = vector.shape_cast %93 : vector<8x32xbf16> to vector<1x8x32xbf16>
    tpu.vector_store %arg8[%c3, %c0_47, %c0_48], %96 {strides = array<i32>} : memref<4x8x32xbf16, #tpu.memory_space<vmem>>, vector<1x8x32xbf16>,
    %97 = vector.extract_strided_slice %53 {offsets = [0, 224], sizes = [8, 32], strides = [1, 1]} : vector<8x256xbf16> to vector<8x32xbf16>
    %c3_49 = arith.constant 3 : index
    %c0_50 = arith.constant 0 : index
    %c0_51 = arith.constant 0 : index
    %98 = vector.load %arg9[%c3_49, %c0_50, %c0_51] : memref<4x8x32xbf16, #tpu.memory_space<vmem>>, vector<1x8x32xbf16>
    %99 = vector.shape_cast %98 : vector<1x8x32xbf16> to vector<8x32xbf16>
    %100 = vector.shape_cast %97 : vector<8x32xbf16> to vector<1x8x32xbf16>
    tpu.vector_store %arg9[%c3_49, %c0_50, %c0_51], %100 {strides = array<i32>} : memref<4x8x32xbf16, #tpu.memory_space<vmem>>, vector<1x8x32xbf16>,
    %101 = vector.extract_strided_slice %18 {offsets = [0, 352], sizes = [8, 32], strides = [1, 1]} : vector<8x384xf32> to vector<8x32xf32>
    %102 = arith.truncf %101 : vector<8x32xf32> to vector<8x32xbf16>
    %c3_52 = arith.constant 3 : index
    %c0_53 = arith.constant 0 : index
    %c0_54 = arith.constant 0 : index
    %103 = vector.load %arg10[%c3_52, %c0_53, %c0_54] : memref<4x8x32xbf16, #tpu.memory_space<vmem>>, vector<1x8x32xbf16>
    %104 = vector.shape_cast %103 : vector<1x8x32xbf16> to vector<8x32xbf16>
    %105 = vector.shape_cast %102 : vector<8x32xbf16> to vector<1x8x32xbf16>
    tpu.vector_store %arg10[%c3_52, %c0_53, %c0_54], %105 {strides = array<i32>} : memref<4x8x32xbf16, #tpu.memory_space<vmem>>, vector<1x8x32xbf16>,
    %cst_55 = arith.constant 0.000000e+00 : f32
    %106 = vector.broadcast %cst_55 : f32 to vector<8x128xf32>
    %c0_56 = arith.constant 0 : index
    %c0_57 = arith.constant 0 : index
    %107 = vector.load %arg11[%c0_56, %c0_57] : memref<8x128xf32, #tpu.memory_space<vmem>>, vector<8x128xf32>
    tpu.vector_store %arg11[%c0_56, %c0_57], %106 {strides = array<i32>} : memref<8x128xf32, #tpu.memory_space<vmem>>, vector<8x128xf32>,
    %108 = tpu.iota {dimensions = array<i32: 0>} : vector<8x8xi32>
    %109 = tpu.iota {dimensions = array<i32: 1>} : vector<8x8xi32>
    %110 = arith.cmpi sle, %109, %108 : vector<8x8xi32>
    %c0_i32_58 = arith.constant 0 : i32
    %c4_i32 = arith.constant 4 : i32
    %111 = arith.addi %c0_i32_58, %c4_i32 : i32
    %c1_i32_59 = arith.constant 1 : i32
    scf.for %arg12 = %c0_i32_58 to %111 step %c1_i32_59  : i32 {
      %c1_i32_69 = arith.constant 1 : i32
      %121 = arith.muli %arg12, %c1_i32_69 : i32
      %c0_i32_70 = arith.constant 0 : i32
      %122 = arith.addi %c0_i32_70, %121 : i32
      %123 = arith.index_cast %122 : i32 to index
      %c0_71 = arith.constant 0 : index
      %c0_72 = arith.constant 0 : index
      %124 = vector.load %arg8[%123, %c0_71, %c0_72] : memref<4x8x32xbf16, #tpu.memory_space<vmem>>, vector<1x8x32xbf16>
      %125 = vector.shape_cast %124 : vector<1x8x32xbf16> to vector<8x32xbf16>
      %126 = arith.index_cast %122 : i32 to index
      %c0_73 = arith.constant 0 : index
      %c0_74 = arith.constant 0 : index
      %127 = vector.load %arg9[%126, %c0_73, %c0_74] : memref<4x8x32xbf16, #tpu.memory_space<vmem>>, vector<1x8x32xbf16>
      %128 = vector.shape_cast %127 : vector<1x8x32xbf16> to vector<8x32xbf16>
      %cst_75 = arith.constant dense<0.000000e+00> : vector<8x8xf32>
      %129 = tpu.matmul %125, %128, %cst_75 {dimension_numbers = #tpu.dot_dimension_numbers<[1], [1], [0], [0], [0, 0, 1, 0], [], []>} : vector<8x32xbf16>, vector<8x32xbf16>, vector<8x8xf32> -> vector<8x8xf32>
      %cst_76 = arith.constant 0.176776692 : f32
      %130 = vector.broadcast %cst_76 : f32 to vector<8x8xf32>
      %131 = arith.mulf %129, %130 : vector<8x8xf32>
      %cst_77 = arith.constant -1.000000e+30 : f32
      %132 = vector.broadcast %cst_77 : f32 to vector<8x8xf32>
      %133 = arith.select %110, %131, %132 : vector<8x8xi1>, vector<8x8xf32>
      %cst_78 = arith.constant dense<0xFF800000> : vector<8xf32>
      %134 = vector.multi_reduction <maximumf>, %133, %cst_78 [1] : vector<8x8xf32> to vector<8xf32>
      %135 = vector.shape_cast %134 : vector<8xf32> to vector<8x1xf32>
      %136 = vector.broadcast %135 : vector<8x1xf32> to vector<8x8xf32>
      %137 = arith.subf %133, %136 : vector<8x8xf32>
      %138 = math.exp %137 : vector<8x8xf32>
      %cst_79 = arith.constant dense<0.000000e+00> : vector<8xf32>
      %139 = vector.multi_reduction <add>, %138, %cst_79 [1] : vector<8x8xf32> to vector<8xf32>
      %140 = vector.shape_cast %139 : vector<8xf32> to vector<8x1xf32>
      %cst_80 = arith.constant 1.000000e+00 : f32
      %141 = vector.broadcast %cst_80 : f32 to vector<8x1xf32>
      %142 = arith.divf %141, %140 : vector<8x1xf32>
      %143 = vector.broadcast %142 : vector<8x1xf32> to vector<8x8xf32>
      %144 = arith.mulf %138, %143 : vector<8x8xf32>
      %145 = arith.truncf %144 : vector<8x8xf32> to vector<8x8xbf16>
      %146 = arith.index_cast %122 : i32 to index
      %c0_81 = arith.constant 0 : index
      %c0_82 = arith.constant 0 : index
      %147 = vector.load %arg10[%146, %c0_81, %c0_82] : memref<4x8x32xbf16, #tpu.memory_space<vmem>>, vector<1x8x32xbf16>
      %148 = vector.shape_cast %147 : vector<1x8x32xbf16> to vector<8x32xbf16>
      %cst_83 = arith.constant dense<0.000000e+00> : vector<8x32xf32>
      %149 = tpu.matmul %145, %148, %cst_83 {dimension_numbers = #tpu.dot_dimension_numbers<[1], [0], [0], [1], [0, 0, 1, 1], [], []>} : vector<8x8xbf16>, vector<8x32xbf16>, vector<8x32xf32> -> vector<8x32xf32>
      %c32_i32_84 = arith.constant 32 : i32
      %150 = arith.muli %122, %c32_i32_84 : i32
      %151 = tpu.assume_multiple %150, 32 : i32
      %152 = arith.index_cast %151 : i32 to index
      %c0_85 = arith.constant 0 : index
      %153 = vector.load %arg4[%152, %c0_85] : memref<128x128xbf16, #tpu.memory_space<vmem>>, vector<32x128xbf16>
      %c0_86 = arith.constant 0 : index
      %c0_87 = arith.constant 0 : index
      %154 = vector.load %arg11[%c0_86, %c0_87] : memref<8x128xf32, #tpu.memory_space<vmem>>, vector<8x128xf32>
      %155 = arith.truncf %149 : vector<8x32xf32> to vector<8x32xbf16>
      %cst_88 = arith.constant dense<0.000000e+00> : vector<8x128xf32>
      %156 = tpu.matmul %155, %153, %cst_88 {dimension_numbers = #tpu.dot_dimension_numbers<[1], [0], [0], [1], [0, 0, 1, 1], [], []>} : vector<8x32xbf16>, vector<32x128xbf16>, vector<8x128xf32> -> vector<8x128xf32>
      %157 = arith.addf %154, %156 : vector<8x128xf32>
      %c0_89 = arith.constant 0 : index
      %c0_90 = arith.constant 0 : index
      %158 = vector.load %arg11[%c0_89, %c0_90] : memref<8x128xf32, #tpu.memory_space<vmem>>, vector<8x128xf32>
      tpu.vector_store %arg11[%c0_89, %c0_90], %157 {strides = array<i32>} : memref<8x128xf32, #tpu.memory_space<vmem>>, vector<8x128xf32>,
    }
    %c4_i32_60 = arith.constant 4 : i32
    %c0_61 = arith.constant 0 : index
    %c0_62 = arith.constant 0 : index
    %c0_63 = arith.constant 0 : index
    %112 = vector.load %arg1[%c0_61, %c0_62, %c0_63] : memref<1x8x128xbf16, #tpu.memory_space<vmem>>, vector<1x8x128xbf16>
    %113 = vector.shape_cast %112 : vector<1x8x128xbf16> to vector<8x128xbf16>
    %114 = arith.extf %113 : vector<8x128xbf16> to vector<8x128xf32>
    %c0_64 = arith.constant 0 : index
    %c0_65 = arith.constant 0 : index
    %115 = vector.load %arg11[%c0_64, %c0_65] : memref<8x128xf32, #tpu.memory_space<vmem>>, vector<8x128xf32>
    %116 = arith.addf %114, %115 : vector<8x128xf32>
    %117 = arith.truncf %116 : vector<8x128xf32> to vector<8x128xbf16>
    %c0_66 = arith.constant 0 : index
    %c0_67 = arith.constant 0 : index
    %c0_68 = arith.constant 0 : index
    %118 = vector.load %arg7[%c0_66, %c0_67, %c0_68] : memref<1x8x128xbf16, #tpu.memory_space<vmem>>, vector<1x8x128xbf16>
    %119 = vector.shape_cast %118 : vector<1x8x128xbf16> to vector<8x128xbf16>
    %120 = vector.shape_cast %117 : vector<8x128xbf16> to vector<1x8x128xbf16>
    tpu.vector_store %arg7[%c0_66, %c0_67, %c0_68], %120 {strides = array<i32>} : memref<1x8x128xbf16, #tpu.memory_space<vmem>>, vector<1x8x128xbf16>,
    return
  }
  func.func @transform_0(%arg0: i32) -> (i32, i32, i32) {
    %c0_i32 = arith.constant 0 : i32
    %c0_i32_0 = arith.constant 0 : i32
    %c0_i32_1 = arith.constant 0 : i32
    return %arg0, %c0_i32, %c0_i32_0 : i32, i32, i32
  }
  func.func @transform_1(%arg0: i32) -> (i32, i32) {
    %c0_i32 = arith.constant 0 : i32
    %c0_i32_0 = arith.constant 0 : i32
    %c0_i32_1 = arith.constant 0 : i32
    return %c0_i32, %c0_i32_0 : i32, i32
  }
  func.func @transform_2(%arg0: i32) -> (i32, i32) {
    %c0_i32 = arith.constant 0 : i32
    %c0_i32_0 = arith.constant 0 : i32
    %c0_i32_1 = arith.constant 0 : i32
    return %c0_i32, %c0_i32_0 : i32, i32
  }
  func.func @transform_3(%arg0: i32) -> (i32, i32) {
    %c0_i32 = arith.constant 0 : i32
    %c0_i32_0 = arith.constant 0 : i32
    %c0_i32_1 = arith.constant 0 : i32
    return %c0_i32, %c0_i32_0 : i32, i32
  }
  func.func @transform_4(%arg0: i32) -> (i32, i32) {
    %c0_i32 = arith.constant 0 : i32
    %c0_i32_0 = arith.constant 0 : i32
    %c0_i32_1 = arith.constant 0 : i32
    return %c0_i32, %c0_i32_0 : i32, i32
  }
  func.func @transform_5(%arg0: i32) -> (i32, i32) {
    %c0_i32 = arith.constant 0 : i32
    %c0_i32_0 = arith.constant 0 : i32
    %c0_i32_1 = arith.constant 0 : i32
    return %c0_i32, %c0_i32_0 : i32, i32
  }
  func.func @transform_6(%arg0: i32) -> (i32, i32, i32) {
    %c0_i32 = arith.constant 0 : i32
    %c0_i32_0 = arith.constant 0 : i32
    %c0_i32_1 = arith.constant 0 : i32
    return %arg0, %c0_i32, %c0_i32_0 : i32, i32, i32
  }
}

module attributes {stable_mosaic.version = 11 : i64} {
  func.func @_head_kernel(%arg0: i32, %arg1: i32, %arg2: memref<16x128xbf16, #tpu.memory_space<vmem>>, %arg3: memref<1x128xf32, #tpu.memory_space<vmem>>, %arg4: memref<128x512xbf16, #tpu.memory_space<vmem>>, %arg5: memref<16x512xbf16, #tpu.memory_space<vmem>>, %arg6: memref<16x128xbf16, #tpu.memory_space<vmem>>, %arg7: memref<16x128xbf16, #tpu.memory_space<vmem>>) attributes {dimension_semantics = [#tpu.dimension_semantics<parallel>, #tpu.dimension_semantics<arbitrary>], iteration_bounds = array<i64: 1, 1>, scalar_prefetch = 0 : i64, scratch_operands = 1 : i64, tpu.core_type = #tpu.core_type<tc>, window_params = [{transform_indices = @transform_0, window_bounds = array<i64: 16, 128>}, {pipeline_mode = #tpu.pipeline_mode<synchronous>, transform_indices = @transform_1, window_bounds = array<i64: 1, 128>}, {transform_indices = @transform_2, window_bounds = array<i64: 128, 512>}, {transform_indices = @transform_3, window_bounds = array<i64: 16, 512>}, {transform_indices = @transform_4, window_bounds = array<i64: 16, 128>}]} {
    %c0_i32 = arith.constant 0 : i32
    %0 = arith.cmpi eq, %arg1, %c0_i32 : i32
    %1 = arith.extui %0 : i1 to i32
    %c0_i32_0 = arith.constant 0 : i32
    %2 = arith.cmpi ne, %1, %c0_i32_0 : i32
    scf.if %2 {
      %c0_6 = arith.constant 0 : index
      %c0_7 = arith.constant 0 : index
      %8 = vector.load %arg2[%c0_6, %c0_7] : memref<16x128xbf16, #tpu.memory_space<vmem>>, vector<16x128xbf16>
      %9 = arith.extf %8 : vector<16x128xbf16> to vector<16x128xf32>
      %10 = arith.mulf %9, %9 : vector<16x128xf32>
      %cst_8 = arith.constant dense<0.000000e+00> : vector<16xf32>
      %11 = vector.multi_reduction <add>, %10, %cst_8 [1] : vector<16x128xf32> to vector<16xf32>
      %12 = vector.shape_cast %11 : vector<16xf32> to vector<16x1xf32>
      %cst_9 = arith.constant 1.280000e+02 : f32
      %13 = vector.broadcast %cst_9 : f32 to vector<16x1xf32>
      %14 = arith.divf %12, %13 : vector<16x1xf32>
      %cst_10 = arith.constant 9.99999997E-7 : f32
      %15 = vector.broadcast %cst_10 : f32 to vector<16x1xf32>
      %16 = arith.addf %14, %15 : vector<16x1xf32>
      %17 = math.rsqrt %16 : vector<16x1xf32>
      %18 = vector.broadcast %17 : vector<16x1xf32> to vector<16x128xf32>
      %19 = arith.mulf %9, %18 : vector<16x128xf32>
      %c0_11 = arith.constant 0 : index
      %c0_12 = arith.constant 0 : index
      %20 = vector.load %arg3[%c0_11, %c0_12] : memref<1x128xf32, #tpu.memory_space<vmem>>, vector<1x128xf32>
      %21 = vector.broadcast %20 : vector<1x128xf32> to vector<16x128xf32>
      %22 = arith.mulf %19, %21 : vector<16x128xf32>
      %23 = arith.truncf %22 : vector<16x128xf32> to vector<16x128xbf16>
      %c0_13 = arith.constant 0 : index
      %c0_14 = arith.constant 0 : index
      %24 = vector.load %arg7[%c0_13, %c0_14] : memref<16x128xbf16, #tpu.memory_space<vmem>>, vector<16x128xbf16>
      tpu.vector_store %arg7[%c0_13, %c0_14], %23 {strides = array<i32>} : memref<16x128xbf16, #tpu.memory_space<vmem>>, vector<16x128xbf16>,
      %c0_15 = arith.constant 0 : index
      %c0_16 = arith.constant 0 : index
      %25 = vector.load %arg7[%c0_15, %c0_16] : memref<16x128xbf16, #tpu.memory_space<vmem>>, vector<16x128xbf16>
      %c0_17 = arith.constant 0 : index
      %c0_18 = arith.constant 0 : index
      %26 = vector.load %arg6[%c0_17, %c0_18] : memref<16x128xbf16, #tpu.memory_space<vmem>>, vector<16x128xbf16>
      tpu.vector_store %arg6[%c0_17, %c0_18], %25 {strides = array<i32>} : memref<16x128xbf16, #tpu.memory_space<vmem>>, vector<16x128xbf16>,
    } else {
    }
    %c0 = arith.constant 0 : index
    %c0_1 = arith.constant 0 : index
    %3 = vector.load %arg7[%c0, %c0_1] : memref<16x128xbf16, #tpu.memory_space<vmem>>, vector<16x128xbf16>
    %c0_2 = arith.constant 0 : index
    %c0_3 = arith.constant 0 : index
    %4 = vector.load %arg4[%c0_2, %c0_3] : memref<128x512xbf16, #tpu.memory_space<vmem>>, vector<128x512xbf16>
    %cst = arith.constant dense<0.000000e+00> : vector<16x512xf32>
    %5 = tpu.matmul %3, %4, %cst {dimension_numbers = #tpu.dot_dimension_numbers<[1], [0], [0], [1], [0, 0, 1, 1], [], []>} : vector<16x128xbf16>, vector<128x512xbf16>, vector<16x512xf32> -> vector<16x512xf32>
    %6 = arith.truncf %5 : vector<16x512xf32> to vector<16x512xbf16>
    %c0_4 = arith.constant 0 : index
    %c0_5 = arith.constant 0 : index
    %7 = vector.load %arg5[%c0_4, %c0_5] : memref<16x512xbf16, #tpu.memory_space<vmem>>, vector<16x512xbf16>
    tpu.vector_store %arg5[%c0_4, %c0_5], %6 {strides = array<i32>} : memref<16x512xbf16, #tpu.memory_space<vmem>>, vector<16x512xbf16>,
    return
  }
  func.func @transform_0(%arg0: i32, %arg1: i32) -> (i32, i32) {
    %c0_i32 = arith.constant 0 : i32
    %c0_i32_0 = arith.constant 0 : i32
    return %arg0, %c0_i32 : i32, i32
  }
  func.func @transform_1(%arg0: i32, %arg1: i32) -> (i32, i32) {
    %c0_i32 = arith.constant 0 : i32
    %c0_i32_0 = arith.constant 0 : i32
    %c0_i32_1 = arith.constant 0 : i32
    return %c0_i32, %c0_i32_0 : i32, i32
  }
  func.func @transform_2(%arg0: i32, %arg1: i32) -> (i32, i32) {
    %c0_i32 = arith.constant 0 : i32
    %c0_i32_0 = arith.constant 0 : i32
    return %c0_i32, %arg1 : i32, i32
  }
  func.func @transform_3(%arg0: i32, %arg1: i32) -> (i32, i32) {
    %c0_i32 = arith.constant 0 : i32
    return %arg0, %arg1 : i32, i32
  }
  func.func @transform_4(%arg0: i32, %arg1: i32) -> (i32, i32) {
    %c0_i32 = arith.constant 0 : i32
    %c0_i32_0 = arith.constant 0 : i32
    return %arg0, %c0_i32 : i32, i32
  }
}

</mosaic_0001>

<bundles_post_ra>
// kernel: tile.19
= control target key start
LH: loop header
LB: loop body
LE: loop exit
PB: predicated region body
PF: predicated region fallthrough
CT: control target
= control target key end

     0   :  { %vm43_vm0 = vcmask 1047556   ;;  %vm45_vm1 = vcmask 261120   ;;  %s94_s22 = smov 32   ;;  %s95_s25 = smov 64   ;;  %vm55_vm2 = vcmask 1048320   ;;  %vm65_vm3 = vcmask 785920   ;;  %s147_s0 = inlined_call_operand.vmem [shape: f32[8,4,32], index: 0, kind: input, shape index: {}]   ;;  %s148_s1 = inlined_call_operand.vmem [shape: f32[8,128], index: 1, kind: output, shape index: {}]  }
   0x1   :  { %v83_v0 = vld [vmem:[%s147_s0 + $0x1c] sm:$0xf]  ;;  %v84_v1 = vld [vmem:[%s147_s0 + $0x18] sm:$0xf]  ;;  %v85_v2 = vld [vmem:[%s147_s0 + $0x14] sm:$0xf] }
   0x2   :  { %9 = vst [vmem:[#allocation0 + $0x38] sm:$0xf] %v83_v0  ;;  %14 = vst [vmem:[#allocation0 + $0x30] sm:$0xf] %v84_v1  ;;  %v86_v3 = vld [vmem:[%s147_s0 + $0x10] sm:$0xf] }
   0x3   :  { %19 = vst [vmem:[#allocation0 + $0x28] sm:$0xf] %v85_v2  ;;  %v87_v4 = vld [vmem:[%s147_s0 + $0xc] sm:$0xf]  ;;  %v88_v5 = vld [vmem:[%s147_s0 + $0x8] sm:$0xf] }
   0x4   :  { %24 = vst [vmem:[#allocation0 + $0x20] sm:$0xf] %v86_v3  ;;  %29 = vst [vmem:[#allocation0 + $0x18] sm:$0xf] %v87_v4  ;;  %v89_v6 = vld [vmem:[%s147_s0 + $0x4] sm:$0xf] }
   0x5   :  { %34 = vst [vmem:[#allocation0 + $0x10] sm:$0xf] %v88_v5  ;;  %v39_v7 = vld [vmem:[%s147_s0] sm:$0xf]  ;;  %38 = vst [vmem:[#allocation0 + $0x8] sm:$0xf] %v89_v6 }
   0x6   :  { %40 = vst [vmem:[#allocation0] sm:$0xf] %v39_v7  ;;  %s93_s0 = smov 96   ;;  %vm75_vm4 = vcmask 523520  }
   0xb   :  { %v50_v8 = vld [vmem:[#allocation0 + $0x3] ss:$8 sm:$0xf0]   ;;  %v60_v9 = vld [vmem:[#allocation0 + $0x2] ss:$8 sm:$0xf0]  }
   0xc   :  { %v70_v14 = vld [vmem:[#allocation0 + $0x1] ss:$8 sm:$0xf0]   ;;  %v42_v17 = vld [vmem:[#allocation0] ss:$8 sm:$0xf0]  }
   0xd   :  { %v48_v10 = vld [vmem:[#allocation0 + $0x3] ss:$8 sm:$0xf]   ;;  %v58_v11 = vld [vmem:[#allocation0 + $0x2] ss:$8 sm:$0xf]  }
   0xe   :  { %v52_v12 = vsel %vm43_vm0, %v50_v8, %v48_v10  ;;  %v68_v13 = vld [vmem:[#allocation0 + $0x1] ss:$8 sm:$0xf]   ;;  %v41_v16 = vld [vmem:[#allocation0] ss:$8 sm:$0xf]   ;;  %v62_v18 = vsel %vm43_vm0, %v60_v9, %v58_v11 }
   0xf   :  { %53 = vrot.lane.b32.xlu0 %v52_v12, %s93_s0  ;;  %v72_v15 = vsel %vm43_vm0, %v70_v14, %v68_v13  ;;  %v44_v19 = vsel %vm43_vm0, %v42_v17, %v41_v16 }
  0x10   :  { %73 = vrot.lane.b32.xlu1 %v72_v15, %s94_s22  ;;  %46 = vst.msk [vmem:[%s148_s1] sm:$0xff] %vm45_vm1, %v44_v19  }
  0x13   :  { %63 = vrot.lane.b32.xlu0 %v62_v18, %s95_s25 }
  0x81   :  { %v54_v20 = vpop.permute.xlu0 %53  }
  0x82   :  { %56 = vst.msk [vmem:[%s148_s1] sm:$0xff] %vm55_vm2, %v54_v20   ;;  %v74_v21 = vpop.permute.xlu1 %73  }
  0x85   :  { %v64_v22 = vpop.permute.xlu0 %63  }
  0x86   :  { %66 = vst.msk [vmem:[%s148_s1] sm:$0xff] %vm65_vm3, %v64_v22  }
  0x87   :  { %76 = vst.msk [vmem:[%s148_s1] sm:$0xff] %vm75_vm4, %v74_v21  }

// kernel: llama_forward.6
= control target key start
LH: loop header
LB: loop body
LE: loop exit
PB: predicated region body
PF: predicated region fallthrough
CT: control target
= control target key end

     0   :  { %v720_v31 = vmov 0   ;;  %s916_s0 = inlined_call_operand.vmem [shape: bf16[16,128], index: 0, kind: input, shape index: {}]   ;;  %s917_s2 = inlined_call_operand.vmem [shape: bf16[128,256], index: 2, kind: input, shape index: {}]   ;;  %s918_s3 = inlined_call_operand.vmem [shape: bf16[128,256], index: 3, kind: input, shape index: {}]   ;;  %s919_s1 = inlined_call_operand.vmem [shape: f32[1,128], index: 1, kind: input, shape index: {}]   ;;  %s920_s4 = inlined_call_operand.vmem [shape: bf16[256,128], index: 4, kind: input, shape index: {}]   ;;  %s921_s5 = inlined_call_operand.vmem [shape: bf16[16,128], index: 5, kind: output, shape index: {}]  }
   0x1   :  { %v605_v0 = vld [vmem:[%s916_s0] sm:$0xff]   ;;  %v636_v3 = vld [vmem:[%s917_s2 + $0x74] ss:$8 sps:$4 sm:$0xff]   ;;  %v640_v5 = vld [vmem:[%s917_s2 + $0x70] ss:$8 sps:$4 sm:$0xff]   ;;  %178 = vmatprep.mubr.bf16.mxu0 %v720_v31  ;;  %317 = vmatprep.mubr.bf16.mxu1 %v720_v31 }
   0x2   :  { %v754_v1 = vunpack.c.l.bf16 %v605_v0  ;;  %v756_v2 = vunpack.c.h.bf16 %v605_v0  ;;  %v638_v4 = vld [vmem:[%s918_s3 + $0x74] ss:$8 sps:$4 sm:$0xff]   ;;  %v641_v6 = vld [vmem:[%s918_s3 + $0x70] ss:$8 sps:$4 sm:$0xff]   ;;  %146 = vmatprep.subr.bf16.mxu0 %v636_v3  ;;  %v642_v9 = vld [vmem:[%s917_s2 + $0x64] ss:$8 sps:$4 sm:$0xff]  }
   0x3   :  { %285 = vmatprep.subr.bf16.mxu1 %v638_v4  ;;  %147 = vmatpush1.bf16.msra.mxu0 %v640_v5  ;;  %v644_v10 = vld [vmem:[%s918_s3 + $0x64] ss:$8 sps:$4 sm:$0xff]   ;;  %v646_v11 = vld [vmem:[%s917_s2 + $0x60] ss:$8 sps:$4 sm:$0xff]   ;;  %v648_v13 = vld [vmem:[%s917_s2 + $0x54] ss:$8 sps:$4 sm:$0xff]  }
   0x4   :  { %v25_v7 = vmul.f32 %v754_v1, %v754_v1  ;;  %v26_v8 = vmul.f32 %v756_v2, %v756_v2  ;;  %286 = vmatpush1.bf16.msra.mxu1 %v641_v6  ;;  %v647_v12 = vld [vmem:[%s918_s3 + $0x60] ss:$8 sps:$4 sm:$0xff]   ;;  %148 = vmatprep.subr.bf16.mxu0 %v642_v9  ;;  %v650_v14 = vld [vmem:[%s918_s3 + $0x54] ss:$8 sps:$4 sm:$0xff]   ;;  %v652_v15 = vld [vmem:[%s917_s2 + $0x50] ss:$8 sps:$4 sm:$0xff]  }
   0x5   :  { %287 = vmatprep.subr.bf16.mxu1 %v644_v10  ;;  %v653_v16 = vld [vmem:[%s918_s3 + $0x50] ss:$8 sps:$4 sm:$0xff]   ;;  %v654_v17 = vld [vmem:[%s917_s2 + $0x44] ss:$8 sps:$4 sm:$0xff]   ;;  %v658_v19 = vld [vmem:[%s917_s2 + $0x40] ss:$8 sps:$4 sm:$0xff]  }
   0x6   :  { %27 = vadd.xlane.f32.xlu0 %v25_v7  ;;  %v656_v18 = vld [vmem:[%s918_s3 + $0x44] ss:$8 sps:$4 sm:$0xff]   ;;  %v659_v20 = vld [vmem:[%s918_s3 + $0x40] ss:$8 sps:$4 sm:$0xff]   ;;  %v660_v21 = vld [vmem:[%s917_s2 + $0x34] ss:$8 sps:$4 sm:$0xff]  }
   0x7   :  { %149 = vmatpush1.bf16.msra.mxu0 %v646_v11  ;;  %v662_v22 = vld [vmem:[%s918_s3 + $0x34] ss:$8 sps:$4 sm:$0xff]   ;;  %v664_v23 = vld [vmem:[%s917_s2 + $0x30] ss:$8 sps:$4 sm:$0xff]   ;;  %v666_v25 = vld [vmem:[%s917_s2 + $0x24] ss:$8 sps:$4 sm:$0xff]  }
   0x8   :  { %288 = vmatpush1.bf16.msra.mxu1 %v647_v12  ;;  %150 = vmatprep.subr.bf16.mxu0 %v648_v13  ;;  %v665_v24 = vld [vmem:[%s918_s3 + $0x30] ss:$8 sps:$4 sm:$0xff]   ;;  %v668_v26 = vld [vmem:[%s918_s3 + $0x24] ss:$8 sps:$4 sm:$0xff]   ;;  %v670_v27 = vld [vmem:[%s917_s2 + $0x20] ss:$8 sps:$4 sm:$0xff]  }
   0x9   :  { %289 = vmatprep.subr.bf16.mxu1 %v650_v14  ;;  %v671_v28 = vld [vmem:[%s918_s3 + $0x20] ss:$8 sps:$4 sm:$0xff]   ;;  %v672_v29 = vld [vmem:[%s917_s2 + $0x14] ss:$8 sps:$4 sm:$0xff]   ;;  %v676_v32 = vld [vmem:[%s917_s2 + $0x10] ss:$8 sps:$4 sm:$0xff]  }
   0xa   :  { %29 = vadd.xlane.f32.xlu0 %v26_v8  ;;  %v674_v30 = vld [vmem:[%s918_s3 + $0x14] ss:$8 sps:$4 sm:$0xff]   ;;  %v677_v33 = vld [vmem:[%s918_s3 + $0x10] ss:$8 sps:$4 sm:$0xff]   ;;  %v678_v34 = vld [vmem:[%s917_s2 + $0x4] ss:$8 sps:$4 sm:$0xff]  }
   0xb   :  { %151 = vmatpush1.bf16.msra.mxu0 %v652_v15  ;;  %v680_v35 = vld [vmem:[%s918_s3 + $0x4] ss:$8 sps:$4 sm:$0xff]   ;;  %v682_v36 = vld [vmem:[%s917_s2] ss:$8 sps:$4 sm:$0xff]   ;;  %v684_v52 = vld [vmem:[%s920_s4 + $0x78] sm:$0xff]  }
   0xc   :  { %290 = vmatpush1.bf16.msra.mxu1 %v653_v16  ;;  %152 = vmatprep.subr.bf16.mxu0 %v654_v17  ;;  %v683_v37 = vld [vmem:[%s918_s3] ss:$8 sps:$4 sm:$0xff]   ;;  %v685_v53 = vld [vmem:[%s920_s4 + $0x38] sm:$0xff]   ;;  %v686_v54 = vld [vmem:[%s920_s4 + $0x70] sm:$0xff]  }
   0xd   :  { %291 = vmatprep.subr.bf16.mxu1 %v656_v18  ;;  %v547_v47 = vld [vmem:[%s919_s1] ss:$0 sm:$0xff]  ;;  %v687_v55 = vld [vmem:[%s920_s4 + $0x30] sm:$0xff]   ;;  %v688_v56 = vld [vmem:[%s920_s4 + $0x68] sm:$0xff]  }
   0xe   :  { %v689_v57 = vld [vmem:[%s920_s4 + $0x28] sm:$0xff]   ;;  %v690_v58 = vld [vmem:[%s920_s4 + $0x60] sm:$0xff]   ;;  %v692_v60 = vld [vmem:[%s920_s4 + $0x58] sm:$0xff]  }
   0xf   :  { %153 = vmatpush1.bf16.msra.mxu0 %v658_v19  ;;  %v691_v59 = vld [vmem:[%s920_s4 + $0x20] sm:$0xff]   ;;  %v693_v61 = vld [vmem:[%s920_s4 + $0x18] sm:$0xff]   ;;  %v694_v62 = vld [vmem:[%s920_s4 + $0x50] sm:$0xff]  }
  0x10   :  { %292 = vmatpush1.bf16.msra.mxu1 %v659_v20  ;;  %154 = vmatprep.subr.bf16.mxu0 %v660_v21  ;;  %v695_v63 = vld [vmem:[%s920_s4 + $0x10] sm:$0xff]   ;;  %v696_v0 = vld [vmem:[%s920_s4 + $0x48] sm:$0xff]   ;;  %v698_v4 = vld [vmem:[%s920_s4 + $0x40] sm:$0xff]  }
  0x11   :  { %293 = vmatprep.subr.bf16.mxu1 %v662_v22  ;;  %v697_v3 = vld [vmem:[%s920_s4 + $0x8] sm:$0xff]   ;;  %v699_v5 = vld [vmem:[%s920_s4] sm:$0xff]  }
  0x13   :  { %155 = vmatpush1.bf16.msra.mxu0 %v664_v23 }
  0x14   :  { %294 = vmatpush1.bf16.msra.mxu1 %v665_v24  ;;  %156 = vmatprep.subr.bf16.mxu0 %v666_v25 }
  0x15   :  { %295 = vmatprep.subr.bf16.mxu1 %v668_v26 }
  0x17   :  { %157 = vmatpush1.bf16.msra.mxu0 %v670_v27 }
  0x18   :  { %296 = vmatpush1.bf16.msra.mxu1 %v671_v28  ;;  %158 = vmatprep.subr.bf16.mxu0 %v672_v29 }
  0x19   :  { %297 = vmatprep.subr.bf16.mxu1 %v674_v30 }
  0x1b   :  { %159 = vmatpush1.bf16.msra.mxu0 %v676_v32 }
  0x1c   :  { %298 = vmatpush1.bf16.msra.mxu1 %v677_v33  ;;  %160 = vmatprep.subr.bf16.mxu0 %v678_v34 }
  0x1d   :  { %299 = vmatprep.subr.bf16.mxu1 %v680_v35 }
  0x1f   :  { %161 = vmatpush1.bf16.msra.mxu0 %v682_v36 }
  0x20   :  { %300 = vmatpush1.bf16.msra.mxu1 %v683_v37  ;;  %613 = vmatprep.subr.bf16.mxu0 %v684_v52 }
  0x8f   :  { %v28_v38 = vpop.xlane.xlu0 %27 }
  0x90   :  { %v32_v39 = vmul.f32 0.0078125, %v28_v38 }
  0x92   :  { %v34_v40 = vadd.f32 1e-06, %v32_v39 }
  0x93   :  { %v30_v41 = vpop.xlane.xlu0 %29 }
  0x94   :  { %700 = vrsqrt.f32 %v34_v40  ;;  %v33_v42 = vmul.f32 0.0078125, %v30_v41 }
  0x96   :  { %v35_v43 = vadd.f32 1e-06, %v33_v42 }
  0x98   :  { %702 = vrsqrt.f32 %v35_v43 }
  0xa1   :  { %v701_v44 = vpop.eup %700 }
  0xa2   :  { %v38_v45 = vmul.f32 %v701_v44, %v754_v1 }
  0xa4   :  { %v47_v49 = vmul.f32 %v547_v47, %v38_v45 }
  0xa5   :  { %v703_v46 = vpop.eup %702 }
  0xa6   :  { %v39_v48 = vmul.f32 %v703_v46, %v756_v2 }
  0xa8   :  { %v48_v50 = vmul.f32 %v547_v47, %v39_v48 }
  0xaa   :  { %v49_v51 = vpack.c.bf16 %v48_v50, %v47_v49 }
  0xac   :  { %179 = vmatmul.mubr.bf16.vlgmr.msra.gmra.mxu0 %v49_v51  ;;  %318 = vmatmul.mubr.bf16.vlgmr.msra.gmra.mxu1 %v49_v51 }
  0xad   :  { %614 = vmatpush3.bf16.msra.mxu0 %v685_v53 }
  0xae   :  { %615 = vmatprep.subr.bf16.mxu0 %v686_v54 }
  0xb1   :  { %616 = vmatpush3.bf16.msra.mxu0 %v687_v55 }
  0xb2   :  { %617 = vmatprep.subr.bf16.mxu0 %v688_v56 }
  0xb5   :  { %618 = vmatpush3.bf16.msra.mxu0 %v689_v57 }
  0xb6   :  { %619 = vmatprep.subr.bf16.mxu0 %v690_v58 }
  0xb9   :  { %620 = vmatpush3.bf16.msra.mxu0 %v691_v59 }
  0xba   :  { %621 = vmatprep.subr.bf16.mxu0 %v692_v60 }
  0xbd   :  { %622 = vmatpush3.bf16.msra.mxu0 %v693_v61 }
  0xbe   :  { %623 = vmatprep.subr.bf16.mxu0 %v694_v62 }
  0xc1   :  { %624 = vmatpush3.bf16.msra.mxu0 %v695_v63 }
  0xc2   :  { %625 = vmatprep.subr.bf16.mxu0 %v696_v0 }
  0xc5   :  { %626 = vmatpush3.bf16.msra.mxu0 %v697_v3 }
  0xc6   :  { %627 = vmatprep.subr.bf16.mxu0 %v698_v4 }
  0xc9   :  { %628 = vmatpush3.bf16.msra.mxu0 %v699_v5 }
 0x16c   :  { %v180_v6 = vpop.f32.mrf.mxu0  ;;  %v319_v22 = vpop.f32.mrf.mxu1 }
 0x16d   :  { %v580_v7 = vmul.f32 -1.442695, %v180_v6 }
 0x16e   :  { %v182_v8 = vpop.f32.mrf.mxu0  ;;  %v321_v23 = vpop.f32.mrf.mxu1 }
 0x16f   :  { %704 = vpow2.f32 %v580_v7  ;;  %v581_v9 = vmul.f32 -1.442695, %v182_v8 }
 0x170   :  { %v184_v10 = vpop.f32.mrf.mxu0  ;;  %v323_v27 = vpop.f32.mrf.mxu1 }
 0x171   :  { %706 = vpow2.f32 %v581_v9  ;;  %v582_v11 = vmul.f32 -1.442695, %v184_v10 }
 0x172   :  { %v186_v12 = vpop.f32.mrf.mxu0  ;;  %v325_v34 = vpop.f32.mrf.mxu1 }
 0x173   :  { %708 = vpow2.f32 %v582_v11  ;;  %v583_v13 = vmul.f32 -1.442695, %v186_v12 }
 0x175   :  { %710 = vpow2.f32 %v583_v13 }
 0x17c   :  { %v705_v14 = vpop.eup %704 }
 0x17d   :  { %v340_v16 = vadd.f32 1.0, %v705_v14 }
 0x17e   :  { %v707_v15 = vpop.eup %706 }
 0x17f   :  { %v341_v17 = vadd.f32 1.0, %v707_v15 }
 0x180   :  { %v709_v18 = vpop.eup %708 }
 0x181   :  { %712 = vrcp.f32 %v341_v17  ;;  %v342_v19 = vadd.f32 1.0, %v709_v18 }
 0x182   :  { %v711_v20 = vpop.eup %710  ;;  %714 = vrcp.f32 %v340_v16 }
 0x183   :  { %716 = vrcp.f32 %v342_v19  ;;  %v343_v21 = vadd.f32 1.0, %v711_v20 }
 0x185   :  { %718 = vrcp.f32 %v343_v21 }
 0x18e   :  { %v713_v24 = vpop.eup %712 }
 0x18f   :  { %v715_v25 = vpop.eup %714  ;;  %v353_v28 = vmul.f32 %v713_v24, %v182_v8 }
 0x190   :  { %v717_v26 = vpop.eup %716  ;;  %v352_v31 = vmul.f32 %v715_v25, %v180_v6 }
 0x191   :  { %v354_v29 = vmul.f32 %v717_v26, %v184_v10  ;;  %v357_v35 = vmul.f32 %v353_v28, %v321_v23 }
 0x192   :  { %v719_v30 = vpop.eup %718  ;;  %v356_v37 = vmul.f32 %v352_v31, %v319_v22 }
 0x193   :  { %v355_v32 = vmul.f32 %v719_v30, %v186_v12  ;;  %v358_v33 = vmul.f32 %v354_v29, %v323_v27 }
 0x195   :  { %v359_v36 = vmul.f32 %v355_v32, %v325_v34  ;;  %v360_v39 = vpack.c.bf16 %v358_v33, %v356_v37 }
 0x197   :  { %v361_v38 = vpack.c.bf16 %v359_v36, %v357_v35 }
 0x199   :  { %522 = vmatprep.mubr.bf16.mxu0 %v361_v38 }
 0x19a   :  { %523 = vmatmul.mubr.bf16.vlgmr.msra.gmra.mxu0 %v360_v39 }
 0x25a   :  { %v629_v40 = vpop.f32.mrf.mxu0 }
 0x25c   :  { %v630_v41 = vpop.f32.mrf.mxu0 }
 0x25d   :  { %v631_v43 = vadd.f32 %v630_v41, %v629_v40 }
 0x25e   :  { %v632_v42 = vpop.f32.mrf.mxu0 }
 0x25f   :  { %v531_v46 = vadd.f32 %v631_v43, %v754_v1 }
 0x260   :  { %v633_v44 = vpop.f32.mrf.mxu0 }
 0x261   :  { %v634_v45 = vadd.f32 %v633_v44, %v632_v42 }
 0x263   :  { %v532_v47 = vadd.f32 %v634_v45, %v756_v2 }
 0x265   :  { %v611_v48 = vpack.c.bf16 %v532_v47, %v531_v46 }
 0x267   :  { %612 = vst [vmem:[%s921_s5] sm:$0xff] %v611_v48  }

// kernel: llama_forward.5
= control target key start
LH: loop header
LB: loop body
LE: loop exit
PB: predicated region body
PF: predicated region fallthrough
CT: control target
= control target key end

     0   :  { %11 = vsyncpa [#allocation7], 0  ;;  %s1201_s21 = smov 0   ;;  %s1402_s0 = inlined_call_operand.vmem [shape: bf16[2,8,128], index: 0, kind: input, shape index: {}]   ;;  %s1403_s1 = inlined_call_operand.vmem [shape: f32[1,128], index: 1, kind: input, shape index: {}]   ;;  %s1404_s2 = inlined_call_operand.vmem [shape: bf16[128,384], index: 2, kind: input, shape index: {}]   ;;  %s1405_s3 = inlined_call_operand.hbm [shape: bf16[128,128], index: 3, kind: input, shape index: {}]   ;;  %s1406_s4 = inlined_call_operand.vmem [shape: f32[8,128], index: 4, kind: input, shape index: {}]   ;;  %s1407_s5 = inlined_call_operand.vmem [shape: f32[8,128], index: 5, kind: input, shape index: {}]   ;;  %s1408_s6 = inlined_call_operand.vmem [shape: bf16[2,8,128], index: 6, kind: output, shape index: {}]  }
   0x1 LB: > { %s1207_s22 = sadd.s32 4294967295, %s1147_s21   ;;  %p922_p0 = scmp.ge.s32.totalorder %s1147_s21, 1  ;;  %s1147_s21 = sphi %s1201_s21, %s17_s21  }
   0x2   : > { %p179_p1 = scmp.lt.s32.totalorder %s1147_s21, 3  ;;  %s1153_s23 = smov [#allocation6]  }
   0x3   : > { %s197_s24 = sshll.u32 %s1153_s23, 4  ;;  %p1036_p3 = scmp.eq.s32.totalorder %s1207_s22, 0  ;;  %s198_s24 = int_to_ptr.vmem [resolvable:$true] %s197_s24 }
   0x4   : > { %p1211_p2 = pnand %p922_p0, %p179_p1  ;;  %s1118_s26 = scalar_lea.vmem %s198_s24, 1024 }
   0x5   : > { %p1119_p7 = scmp.ne.s32.totalorder %s198_s24, %s1118_s26  ;;  %p1126_p10 = scmp.lt.s32.totalorder %s198_s24, %s198_s24 }
   0x6   : > { %p1032_p4 = pneg %p1211_p2  ;;  %p1127_p11 = scmp.lt.s32.totalorder %s1118_s26, %s1118_s26 }
   0x8   : > { %p1033_p5 = pnand %p1036_p3, %p1032_p4  ;;  %p1128_p12 = por %p1127_p11, %p1126_p10 }
   0xa   : > { %p1109_p6 = pneg %p1033_p5 }
   0xc   : > { %p1121_p8 = pnand %p1119_p7, %p1109_p6 }
   0xe   : > { %p1122_p9 = pneg %p1121_p8 }
  0x10   : > { %p1129_p13 = pnand %p1128_p12, %p1122_p9 }
  0x12   : > { %1132 = shalt.err (!%p1129_p13)
}
  0x13   : > { %s1154_s27 = smov 64   ;;  %s1155_s28 = smov 4  }
  0x14   : > { %1035 = dma.hbm_to_vmem [thread:$0]  (!%p1033_p5), %s1405_s3, 1024, %s198_s24, [#allocation7], %s1154_s27, %s1154_s27, %s1155_s28  }
  0x15   : > { %226 = sbr.rel (%p1211_p2) target bundleno = 1579 (0x62b), region = 44 }
  0x1a   : > { %1142 = dma.done.wait (%p1036_p3), [#allocation7], 1024  }
  0x1b   : > { %1144 = vsyncadd (%p1036_p3), [#allocation7], 4294966272  ;;  %p254_p0 = scmp.lt.s32.totalorder %s1207_s22, 1  ;;  %v1156_v0 = vmov 0.0   ;;  %v1067_v3 = vld [vmem:[%s1404_s2 + $0xac] ss:$12 sps:$4 sm:$0xff]   ;;  %v525_v37 = vlaneseq }
  0x1c   : > { %988 = vmatprep.subr.bf16.mxu1 %v1156_v0  ;;  %639 = vst [vmem:[#allocation5] sm:$0xff] %v1156_v0  ;;  %v1069_v4 = vld [vmem:[%s1404_s2 + $0xa8] ss:$12 sps:$4 sm:$0xff]   ;;  %v1070_v5 = vld [vmem:[%s1404_s2 + $0xb0] ss:$12 sps:$4 sm:$0xff]   ;;  %442 = vmatprep.subr.bf16.mxu0 %v1067_v3  ;;  %v1157_v23 = vmov 0  }
  0x1d   : > { %s1411_s22 = smov (!%p254_p0, %s1207_s22), 1  ;;  %v1071_v7 = vld [vmem:[%s1404_s2 + $0x94] ss:$12 sps:$4 sm:$0xff]   ;;  %v1073_v8 = vld [vmem:[%s1404_s2 + $0x90] ss:$12 sps:$4 sm:$0xff]   ;;  %443 = vmatpush1.bf16.msra.mxu0 %v1069_v4  ;;  %989 = vmatpush3.bf16.msra.mxu1 %v1070_v5  ;;  %vm1158_vm0 = vmmov 0  }
  0x1e   : > { %s927_s7 = sshll.u32 %s1411_s22, 2  ;;  %v1074_v9 = vld [vmem:[%s1404_s2 + $0x98] ss:$12 sps:$4 sm:$0xff]   ;;  %444 = vmatprep.subr.bf16.mxu0 %v1071_v7  ;;  %990 = vmatprep.subr.bf16.mxu1 %v1156_v0  ;;  %v1075_v10 = vld [vmem:[%s1404_s2 + $0x7c] ss:$12 sps:$4 sm:$0xff]   ;;  %v1332_v38 = vand.u32 127, %v525_v37 }
  0x1f   : > { %s1236_s10 = scalar_lea.vmem %s1402_s0, %s927_s7  ;;  %s1241_s13 = scalar_lea.vmem %s1408_s6, %s927_s7  ;;  %v1077_v11 = vld [vmem:[%s1404_s2 + $0x78] ss:$12 sps:$4 sm:$0xff]   ;;  %v1078_v12 = vld [vmem:[%s1404_s2 + $0x80] ss:$12 sps:$4 sm:$0xff]   ;;  %v1082_v15 = vld [vmem:[%s1404_s2 + $0x68] ss:$12 sps:$4 sm:$0xff]   ;;  %474 = vmatprep.mubr.bf16.mxu0 %v1157_v23  ;;  %1004 = vmatprep.mubr.msk.bf16.mxu1 %vm1158_vm0, %v1156_v0 }
  0x20   : > { %v263_v1 = vld [vmem:[%s1236_s10] sm:$0xf]  ;;  %v1079_v13 = vld [vmem:[%s1404_s2 + $0x64] ss:$12 sps:$4 sm:$0xff]   ;;  %v1083_v16 = vld [vmem:[%s1404_s2 + $0x4c] ss:$12 sps:$4 sm:$0xff]  }
  0x21   : > { %v1244_v2 = vunpack.c.l.bf16 %v263_v1  ;;  %445 = vmatpush1.bf16.msra.mxu0 %v1073_v8  ;;  %991 = vmatpush3.bf16.msra.mxu1 %v1074_v9  ;;  %v1081_v14 = vld [vmem:[%s1404_s2 + $0x60] ss:$12 sps:$4 sm:$0xff]   ;;  %v1085_v17 = vld [vmem:[%s1404_s2 + $0x48] ss:$12 sps:$4 sm:$0xff]   ;;  %v1086_v18 = vld [vmem:[%s1404_s2 + $0x50] ss:$12 sps:$4 sm:$0xff]  }
  0x22   : > { %992 = vmatprep.subr.bf16.mxu1 %v1156_v0  ;;  %446 = vmatprep.subr.bf16.mxu0 %v1075_v10  ;;  %v1087_v19 = vld [vmem:[%s1404_s2 + $0x34] ss:$12 sps:$4 sm:$0xff]   ;;  %v1089_v20 = vld [vmem:[%s1404_s2 + $0x30] ss:$12 sps:$4 sm:$0xff]   ;;  %v1090_v21 = vld [vmem:[%s1404_s2 + $0x38] ss:$12 sps:$4 sm:$0xff]  }
  0x23   : > { %v265_v6 = vmul.f32 %v1244_v2, %v1244_v2  ;;  %v1091_v22 = vld [vmem:[%s1404_s2 + $0x1c] ss:$12 sps:$4 sm:$0xff]   ;;  %v1093_v24 = vld [vmem:[%s1404_s2 + $0x18] ss:$12 sps:$4 sm:$0xff]   ;;  %v1094_v25 = vld [vmem:[%s1404_s2 + $0x20] ss:$12 sps:$4 sm:$0xff]  }
  0x24   : > { %v1095_v26 = vld [vmem:[%s1404_s2 + $0x4] ss:$12 sps:$4 sm:$0xff]   ;;  %v1097_v27 = vld [vmem:[%s1404_s2] ss:$12 sps:$4 sm:$0xff]   ;;  %v1098_v28 = vld [vmem:[%s1404_s2 + $0x8] ss:$12 sps:$4 sm:$0xff]  }
  0x25   : > { %266 = vadd.xlane.f32.xlu0 %v265_v6  ;;  %447 = vmatpush1.bf16.msra.mxu0 %v1077_v11  ;;  %v929_v33 = vld [vmem:[%s1403_s1] ss:$0 sm:$0xff]  ;;  %v1334_v39 = vshrl.u32 %v525_v37, 7  ;;  %vm580_vm2 = vcmask 257024   ;;  %s1159_s23 = smov 16   ;;  %s1160_s24 = smov 112  }
  0x26   : > { %993 = vmatpush3.bf16.msra.mxu1 %v1078_v12  ;;  %448 = vmatprep.subr.bf16.mxu0 %v1079_v13  ;;  %s1161_s25 = smov 96   ;;  %s1162_s26 = smov 64   ;;  %v527_v49 = vadd.s32 128, %v1332_v38  ;;  %vm558_vm3 = vcmp.lt.s32.totalorder %v1332_v38, 112  ;;  %v532_v51 = vand.u32 31, %v1332_v38  ;;  %vm565_vm4 = vcmp.lt.s32.totalorder %v1332_v38, 16 }
  0x27   : > { %994 = vmatprep.subr.bf16.mxu1 %v1156_v0  ;;  %vm642_vm1 = vcmp.le.s32.totalorder %v1332_v38, %v1334_v39  ;;  %v523_v57 = vld [vmem:[%s1406_s4] sm:$0xff]  ;;  %s1163_s7 = smov 32   ;;  %s1366_s8 = smov 0  }
  0x28   : > { %v539_v52 = vand.u32 31, %v527_v49  ;;  %vm552_vm5 = vcmp.lt.s32.totalorder %v532_v51, 16  ;;  %v524_v60 = vld [vmem:[%s1407_s5] sm:$0xff] }
  0x29   : > { %449 = vmatpush1.bf16.msra.mxu0 %v1081_v14 }
  0x2a   : > { %995 = vmatpush3.bf16.msra.mxu1 %v1082_v15  ;;  %450 = vmatprep.subr.bf16.mxu0 %v1083_v16  ;;  %vm553_vm6 = vcmp.lt.s32.totalorder %v539_v52, 16 }
  0x2b   : > { %996 = vmatprep.subr.bf16.mxu1 %v1156_v0 }
  0x2d   : > { %451 = vmatpush1.bf16.msra.mxu0 %v1085_v17 }
  0x2e   : > { %997 = vmatpush3.bf16.msra.mxu1 %v1086_v18  ;;  %452 = vmatprep.subr.bf16.mxu0 %v1087_v19 }
  0x2f   : > { %998 = vmatprep.subr.bf16.mxu1 %v1156_v0 }
  0x31   : > { %453 = vmatpush1.bf16.msra.mxu0 %v1089_v20 }
  0x32   : > { %999 = vmatpush3.bf16.msra.mxu1 %v1090_v21  ;;  %454 = vmatprep.subr.bf16.mxu0 %v1091_v22 }
  0x33   : > { %1000 = vmatprep.subr.bf16.mxu1 %v1156_v0 }
  0x35   : > { %455 = vmatpush1.bf16.msra.mxu0 %v1093_v24 }
  0x36   : > { %1001 = vmatpush3.bf16.msra.mxu1 %v1094_v25  ;;  %456 = vmatprep.subr.bf16.mxu0 %v1095_v26 }
  0x37   : > { %1002 = vmatprep.subr.bf16.mxu1 %v1156_v0 }
  0x39   : > { %457 = vmatpush1.bf16.msra.mxu0 %v1097_v27 }
  0x3a   : > { %1003 = vmatpush3.bf16.msra.mxu1 %v1098_v28 }
  0xae   : > { %v267_v29 = vpop.xlane.xlu0 %266 }
  0xaf   : > { %v269_v30 = vmul.f32 0.0078125, %v267_v29 }
  0xb1   : > { %v270_v31 = vadd.f32 1e-06, %v269_v30 }
  0xb3   : > { %1099 = vrsqrt.f32 %v270_v31 }
  0xc0   : > { %v1100_v32 = vpop.eup %1099 }
  0xc1   : > { %v272_v34 = vmul.f32 %v1100_v32, %v1244_v2 }
  0xc3   : > { %v280_v35 = vmul.f32 %v929_v33, %v272_v34 }
  0xc5   : > { %v281_v36 = vpack.c.bf16 %v280_v35, %v280_v35 }
  0xc7   : > { %475 = vmatmul.mubr.bf16.vlgmr.msra.gmra.mxu0 %v281_v36  ;;  %1005 = vmatmul.mubr.bf16.vlgmr.msra.gmra.mxu1 %v281_v36 }
 0x187   : > { %v476_v40 = vpop.f32.mrf.mxu0  ;;  %v517_v41 = vpop.f32.mrf.mxu1 }
 0x188   : > { %v583_v42 = vpack.c.bf16 %v517_v41, %v517_v41  ;;  %561 = vrot.lane.b32.xlu1 %v476_v40, %s1159_s23  ;;  %554 = vrot.lane.b32.xlu0 %v476_v40, %s1160_s24  ;;  %v568_v2 = vmul.f32 %v523_v57, %v476_v40 }
 0x189   : > { %v478_v43 = vpop.f32.mrf.mxu0  ;;  %v1006_v44 = vpop.f32.mrf.mxu1 }
 0x18a   : > { %584 = vst.msk [vmem:[#allocation4] sm:$0xf] %vm580_vm2, %v583_v42  ;;  %v569_v3 = vmul.f32 %v523_v57, %v478_v43 }
 0x18b   : > { %v480_v45 = vpop.f32.mrf.mxu0  ;;  %v520_v46 = vpop.f32.mrf.mxu1 }
 0x18c   : > { %556 = vrot.lane.b32.xlu1 %v478_v43, %s1160_s24 }
 0x18d   : > { %v481_v47 = vpop.f32.mrf.mxu0  ;;  %v1007_v48 = vpop.f32.mrf.mxu1 }
 0x190   : > { %563 = vrot.lane.b32.xlu1 %v478_v43, %s1159_s23 }
 0x194   : > { %604 = vrot.lane.b32.xlu1 %v583_v42, %s1161_s25 }
 0x198   : > { %619 = vrot.lane.b32.xlu1 %v583_v42, %s1162_s26 }
 0x1fa   : > { %v562_v50 = vpop.permute.xlu1 %561  ;;  %v555_v53 = vpop.permute.xlu0 %554 }
 0x1fe   : > { %v557_v54 = vpop.permute.xlu1 %556 }
 0x1ff   : > { %v559_v55 = vsel %vm558_vm3, %v555_v53, %v557_v54  ;;  %v560_v56 = vsel %vm558_vm3, %v557_v54, %v555_v53 }
 0x200   : > { %v570_v58 = vsub.f32 0.0, %v559_v55  ;;  %v571_v59 = vsub.f32 0.0, %v560_v56 }
 0x202   : > { %v564_v61 = vpop.permute.xlu1 %563 }
 0x203   : > { %v566_v62 = vsel %vm565_vm4, %v562_v50, %v564_v61  ;;  %v567_v63 = vsel %vm565_vm4, %v564_v61, %v562_v50 }
 0x204   : > { %v572_v0 = vsel %vm552_vm5, %v570_v58, %v567_v63  ;;  %v573_v1 = vsel %vm553_vm6, %v571_v59, %v566_v62 }
 0x205   : > { %v574_v4 = vmul.f32 %v572_v0, %v524_v60  ;;  %v575_v5 = vmul.f32 %v573_v1, %v524_v60 }
 0x206   : > { %v605_v6 = vpop.permute.xlu1 %604 }
 0x207   : > { %v576_v7 = vadd.f32 %v574_v4, %v568_v2  ;;  %v577_v8 = vadd.f32 %v575_v5, %v569_v3  ;;  %608 = vst.msk [vmem:[#allocation4 + $0x4] sm:$0xf] %vm580_vm2, %v605_v6 }
 0x209   : > { %v578_v9 = vpack.c.bf16 %v576_v7, %v576_v7  ;;  %v579_v10 = vpack.c.bf16 %v577_v8, %v577_v8 }
 0x20a   : > { %v620_v11 = vpop.permute.xlu1 %619 }
 0x20b   : > { %623 = vst.msk [vmem:[#allocation4 + $0x8] sm:$0xf] %vm580_vm2, %v620_v11  ;;  %588 = vrot.lane.b32.xlu1 %v578_v9, %s1161_s25  ;;  %581 = vst.msk [vmem:[#allocation2] sm:$0xf] %vm580_vm2, %v578_v9  ;;  %614 = vrot.lane.b32.xlu0 %v579_v10, %s1162_s26 }
 0x20c   : > { %582 = vst.msk [vmem:[#allocation3] sm:$0xf] %vm580_vm2, %v579_v10 }
 0x20f   : > { %624 = vrot.lane.b32.xlu0 %v578_v9, %s1163_s7  ;;  %596 = vrot.lane.b32.xlu1 %v579_v10, %s1161_s25 }
 0x213   : > { %634 = vrot.lane.b32.xlu0 %v583_v42, %s1163_s7  ;;  %609 = vrot.lane.b32.xlu1 %v578_v9, %s1162_s26 }
 0x217   : > { %629 = vrot.lane.b32.xlu1 %v579_v10, %s1163_s7 }
 0x27d   : > { %v589_v12 = vpop.permute.xlu1 %588  ;;  %v615_v13 = vpop.permute.xlu0 %614 }
 0x27e   : > { %592 = vst.msk [vmem:[#allocation2 + $0x4] sm:$0xf] %vm580_vm2, %v589_v12  ;;  %618 = vst.msk [vmem:[#allocation3 + $0x8] sm:$0xf] %vm580_vm2, %v615_v13 }
 0x281   : > { %v625_v14 = vpop.permute.xlu0 %624  ;;  %v597_v15 = vpop.permute.xlu1 %596 }
 0x282   : > { %628 = vst.msk [vmem:[#allocation2 + $0xc] sm:$0xf] %vm580_vm2, %v625_v14  ;;  %600 = vst.msk [vmem:[#allocation3 + $0x4] sm:$0xf] %vm580_vm2, %v597_v15 }
 0x285   : > { %v635_v16 = vpop.permute.xlu0 %634  ;;  %v610_v17 = vpop.permute.xlu1 %609 }
 0x286   : > { %638 = vst.msk [vmem:[#allocation4 + $0xc] sm:$0xf] %vm580_vm2, %v635_v16  ;;  %613 = vst.msk [vmem:[#allocation2 + $0x8] sm:$0xf] %vm580_vm2, %v610_v17 }
 0x289   : > { %v630_v18 = vpop.permute.xlu1 %629 }
 0x28a   : > { %633 = vst.msk [vmem:[#allocation3 + $0xc] sm:$0xf] %vm580_vm2, %v630_v18 }
 0x28b LB: >> { %v1164_v19 = vmov 0.0   ;;  %vm1165_vm7 = vmmov 0   ;;  %s1373_s9 = sshll.u32 %s1151_s8, 2  ;;  %vm655_vm8 = vcmask 261120   ;;  %s962_s11 = sshll.u32 %s1151_s8, 5  ;;  %vm704_vm9 = vcmask 64512   ;;  %s1151_s8 = sphi %s1366_s8, %s648_s8  }
 0x28c   : >> { %1008 = vmatprep.subr.bf16.mxu0 %v1164_v19  ;;  %1010 = vmatprep.mubr.msk.bf16.mxu0 %vm1165_vm7, %v1164_v19  ;;  %s769_s12 = sshra.s32 %s962_s11, 3  ;;  %s653_s14 = scalar_lea.vmem [#allocation3], %s1373_s9  ;;  %vm724_vm10 = vcmask 1043456   ;;  %v777_v50 = vld [vmem:[#allocation5] sm:$0xff] }
 0x28d   : >> { %1014 = vmatprep.subr.bf16.mxu1 %v1164_v19  ;;  %1016 = vmatprep.mubr.msk.bf16.mxu1 %vm1165_vm7, %v1164_v19  ;;  %s963_s15 = sshll.u32 %s769_s12, 2  ;;  %s650_s17 = scalar_lea.vmem [#allocation2], %s1373_s9 }
 0x28e   : >> { %s1379_s16 = scalar_lea.vmem [#allocation6], %s963_s15  ;;  %v651_v22 = vld [vmem:[%s650_s17] sm:$0xf]  ;;  %s719_s18 = scalar_lea.vmem [#allocation4], %s1373_s9 }
 0x28f   : >> { %v720_v35 = vld [vmem:[%s719_s18] sm:$0xf]  ;;  %v1101_v42 = vld [vmem:[%s1379_s16 + $0x8] sm:$0xff]   ;;  %s648_s8 = sadd.s32 1, %s1151_s8  }
 0x290   : >> { %v726_v36 = vsel %vm724_vm10, %v720_v35, 0  ;;  %v1102_v44 = vld [vmem:[%s1379_s16] sm:$0xff]   ;;  %p645_p1 = scmp.ge.s32.totalorder %s648_s8, 4  }
 0x291   : >> { %v654_v20 = vld [vmem:[%s653_s14] sm:$0xf]  ;;  %1015 = vmatpush3.bf16.msra.mxu1 %v726_v36 }
 0x292   : >> { %v660_v21 = vsel %vm655_vm8, %v654_v20, 0  ;;  %1020 = vmatprep.subr.bf16.mxu1 %v1164_v19  ;;  %v836_v56 = vld [vmem:[%s1236_s10] sm:$0xf] (%p645_p1) }
 0x293   : >> { %1009 = vmatpush3.bf16.xpose.msra.mxu0 %v660_v21  ;;  %v837_v58 = vunpack.c.l.bf16 (%p645_p1), %v836_v56 }
 0x29a   : >> { %1011 = vmatmul.mubr.msk.bf16.vlgmr.msra.gmra.mxu0 %vm655_vm8, %v651_v22 }
 0x35a   : >> { %v696_v23 = vpop.f32.mrf.mxu0 }
 0x35b   : >> { %v702_v24 = vmul.f32 0.17677669, %v696_v23 }
 0x35c   : >> { %v1012_v25 = vpop.f32.mrf.mxu0 }
 0x35d   : >> { %v703_v26 = vsel %vm642_vm1, %v702_v24, -1e+30 }
 0x35e   : >> { %v699_v27 = vpop.f32.mrf.mxu0  ;;  %v705_v28 = vsel %vm704_vm9, %v703_v26, -inf }
 0x35f   : >> { %706 = vmax.xlane.f32.xlu0 %v705_v28 }
 0x360   : >> { %v1013_v29 = vpop.f32.mrf.mxu0 }
 0x3e8   : >> { %v707_v30 = vpop.xlane.xlu0 %706 }
 0x3e9   : >> { %v708_v31 = vsub.f32 %v703_v26, %v707_v30 }
 0x3eb   : >> { %v709_v32 = vmul.f32 1.442695, %v708_v31 }
 0x3ed   : >> { %1103 = vpow2.f32 %v709_v32 }
 0x3fa   : >> { %v1104_v33 = vpop.eup %1103 }
 0x3fb   : >> { %v711_v34 = vsel %vm704_vm9, %v1104_v33, 0.0 }
 0x3fc   : >> { %712 = vadd.xlane.f32.xlu0 %v711_v34 }
 0x485   : >> { %v713_v37 = vpop.xlane.xlu0 %712 }
 0x486   : >> { %1105 = vrcp.f32 %v713_v37 }
 0x493   : >> { %v1106_v40 = vpop.eup %1105 }
 0x494   : >> { %v716_v41 = vmul.f32 %v1106_v40, %v1104_v33 }
 0x496   : >> { %v717_v43 = vpack.c.bf16 %v716_v41, %v716_v41 }
 0x498   : >> { %1017 = vmatmul.mubr.msk.bf16.vlgmr.msra.gmra.mxu1 %vm704_vm9, %v717_v43 }
 0x499   : >> { %1021 = vmatpush3.bf16.msra.mxu1 %v1101_v42  ;;  %1024 = vmatprep.mubr.msk.bf16.mxu1 %vm1165_vm7, %v1164_v19 }
 0x49a   : >> { %1022 = vmatprep.subr.bf16.mxu1 %v1164_v19 }
 0x49d   : >> { %1023 = vmatpush3.bf16.msra.mxu1 %v1102_v44 }
 0x558   : >> { %v762_v45 = vpop.f32.mrf.mxu1 }
 0x559   : >> { %v778_v46 = vpack.c.bf16 %v762_v45, %v762_v45 }
 0x55a   : >> { %v1018_v47 = vpop.f32.mrf.mxu1 }
 0x55b   : >> { %1025 = vmatmul.mubr.msk.bf16.vlgmr.msra.gmra.mxu1 %vm655_vm8, %v778_v46 }
 0x55c   : >> { %v765_v48 = vpop.f32.mrf.mxu1 }
 0x55e   : >> { %v1019_v49 = vpop.f32.mrf.mxu1 }
 0x61b   : >> { %v828_v51 = vpop.f32.mrf.mxu1 }
 0x61c   : >> { %v834_v52 = vadd.f32 %v828_v51, %v777_v50 }
 0x61d   : >> { %v1026_v53 = vpop.f32.mrf.mxu1 }
 0x61e   : >> { %835 = vst [vmem:[#allocation5] sm:$0xff] %v834_v52 }
 0x61f   : >> { %v831_v54 = vpop.f32.mrf.mxu1 }
 0x621   : >> { %v1027_v55 = vpop.f32.mrf.mxu1 }
 0x622   : > { %647 = sbr.rel (!%p645_p1) target bundleno = 651 (0x28b), region = 99 }
 0x625   : > { %v838_v57 = vld [vmem:[#allocation5] sm:$0xff] (%p645_p1) }
 0x626   : > { %v839_v59 = vadd.f32 (%p645_p1), %v838_v57, %v837_v58 }
 0x628   : > { %v840_v60 = vpack.c.bf16 %v839_v59, %v839_v59 }
 0x62a   : > { %841 = vst [vmem:[%s1241_s13] sm:$0xf] %v840_v60 }
 0x62b PF: > { %s17_s21 = sadd.s32 1, %s1147_s21  }
 0x62c   : > { %p14_p2 = scmp.ge.s32.totalorder %s17_s21, 4  }
 0x62e   :  { %16 = sbr.rel (!%p14_p2) target bundleno = 1 (0x1), region = 110 }
 0x633   :  { %861 = vsyncpa [#allocation7], 1 }
 0x634   :  { %863 = vsyncpa [#allocation7 + $0x1], 1 }

// kernel: llama_forward.7
= control target key start
LH: loop header
LB: loop body
LE: loop exit
PB: predicated region body
PF: predicated region fallthrough
CT: control target
= control target key end

     0   :  { %s1126_s21 = smov 0   ;;  %s1303_s0 = inlined_call_operand.vmem [shape: bf16[2,8,128], index: 0, kind: input, shape index: {}]   ;;  %s1304_s1 = inlined_call_operand.vmem [shape: f32[1,128], index: 1, kind: input, shape index: {}]   ;;  %s1305_s2 = inlined_call_operand.vmem [shape: bf16[128,384], index: 2, kind: input, shape index: {}]   ;;  %s1306_s3 = inlined_call_operand.vmem [shape: bf16[128,128], index: 3, kind: input, shape index: {}]   ;;  %s1307_s4 = inlined_call_operand.vmem [shape: f32[8,128], index: 4, kind: input, shape index: {}]   ;;  %s1308_s5 = inlined_call_operand.vmem [shape: f32[8,128], index: 5, kind: input, shape index: {}]   ;;  %s1309_s6 = inlined_call_operand.vmem [shape: bf16[2,8,128], index: 6, kind: output, shape index: {}]  }
   0x1 LB: > { %s893_s22 = sadd.s32 4294967295, %s1075_s21   ;;  %p897_p0 = scmp.ge.s32.totalorder %s1075_s21, 1  ;;  %s1075_s21 = sphi %s1126_s21, %s16_s21  }
   0x2   : > { %p211_p1 = scmp.lt.s32.totalorder %s1075_s21, 3 }
   0x4   : > { %p212_p2 = pnand %p897_p0, %p211_p1 }
   0x5   : > { %p239_p3 = scmp.lt.s32.totalorder (!%p212_p2), %s893_s22, 1  ;;  %s1084_s12 = smov (!%p212_p2), 16  }
   0x6   : > { %215 = sbr.rel (%p212_p2) target bundleno = 1561 (0x619), region = 44  ;;  %s1085_s13 = smov (!%p212_p2), 112  }
   0x7   : > { %s1086_s15 = smov (!%p212_p2), 96   ;;  %s1087_s16 = smov (!%p212_p2), 64  }
   0x8   : > { %s1088_s23 = smov (!%p212_p2), 32   ;;  %s1264_s24 = smov (!%p212_p2), 0  }
   0xb   : > { %v1025_v0 = vld [vmem:[%s1305_s2 + $0xac] ss:$12 sps:$4 sm:$0xff]   ;;  %v1081_v1 = vmov 0.0   ;;  %v1027_v2 = vld [vmem:[%s1305_s2 + $0xa8] ss:$12 sps:$4 sm:$0xff]   ;;  %s1311_s22 = smov (!%p239_p3, %s893_s22), 1  ;;  %v510_v37 = vlaneseq }
   0xc   : > { %959 = vmatprep.subr.bf16.mxu1 %v1081_v1  ;;  %624 = vst [vmem:[#allocation5] sm:$0xff] %v1081_v1  ;;  %427 = vmatprep.subr.bf16.mxu0 %v1025_v0  ;;  %v1028_v3 = vld [vmem:[%s1305_s2 + $0xb0] ss:$12 sps:$4 sm:$0xff]   ;;  %v1029_v4 = vld [vmem:[%s1305_s2 + $0x94] ss:$12 sps:$4 sm:$0xff]   ;;  %s898_s9 = sshll.u32 %s1311_s22, 2 }
   0xd   : > { %428 = vmatpush1.bf16.msra.mxu0 %v1027_v2  ;;  %v1031_v5 = vld [vmem:[%s1305_s2 + $0x90] ss:$12 sps:$4 sm:$0xff]   ;;  %960 = vmatpush3.bf16.msra.mxu1 %v1028_v3  ;;  %v1032_v6 = vld [vmem:[%s1305_s2 + $0x98] ss:$12 sps:$4 sm:$0xff]   ;;  %s1157_s14 = scalar_lea.vmem %s1303_s0, %s898_s9  ;;  %s1162_s17 = scalar_lea.vmem %s1309_s6, %s898_s9  ;;  %v1036_v12 = vld [vmem:[%s1305_s2 + $0x80] ss:$12 sps:$4 sm:$0xff]  }
   0xe   : > { %429 = vmatprep.subr.bf16.mxu0 %v1029_v4  ;;  %961 = vmatprep.subr.bf16.mxu1 %v1081_v1  ;;  %v248_v7 = vld [vmem:[%s1157_s14] sm:$0xf]  ;;  %v1033_v10 = vld [vmem:[%s1305_s2 + $0x7c] ss:$12 sps:$4 sm:$0xff]   ;;  %v1035_v11 = vld [vmem:[%s1305_s2 + $0x78] ss:$12 sps:$4 sm:$0xff]  }
   0xf   : > { %v249_v8 = vunpack.c.l.bf16 %v248_v7  ;;  %v1037_v13 = vld [vmem:[%s1305_s2 + $0x64] ss:$12 sps:$4 sm:$0xff]   ;;  %v1039_v14 = vld [vmem:[%s1305_s2 + $0x60] ss:$12 sps:$4 sm:$0xff]   ;;  %v1040_v15 = vld [vmem:[%s1305_s2 + $0x68] ss:$12 sps:$4 sm:$0xff]  }
  0x10   : > { %v1041_v16 = vld [vmem:[%s1305_s2 + $0x4c] ss:$12 sps:$4 sm:$0xff]   ;;  %v1043_v17 = vld [vmem:[%s1305_s2 + $0x48] ss:$12 sps:$4 sm:$0xff]   ;;  %v1044_v18 = vld [vmem:[%s1305_s2 + $0x50] ss:$12 sps:$4 sm:$0xff]  }
  0x11   : > { %430 = vmatpush1.bf16.msra.mxu0 %v1031_v5  ;;  %962 = vmatpush3.bf16.msra.mxu1 %v1032_v6  ;;  %v250_v9 = vmul.f32 %v249_v8, %v249_v8  ;;  %v1045_v19 = vld [vmem:[%s1305_s2 + $0x34] ss:$12 sps:$4 sm:$0xff]   ;;  %v1047_v20 = vld [vmem:[%s1305_s2 + $0x30] ss:$12 sps:$4 sm:$0xff]   ;;  %v1048_v21 = vld [vmem:[%s1305_s2 + $0x38] ss:$12 sps:$4 sm:$0xff]  }
  0x12   : > { %963 = vmatprep.subr.bf16.mxu1 %v1081_v1  ;;  %431 = vmatprep.subr.bf16.mxu0 %v1033_v10  ;;  %v1049_v22 = vld [vmem:[%s1305_s2 + $0x1c] ss:$12 sps:$4 sm:$0xff]   ;;  %v1082_v23 = vmov 0   ;;  %vm1083_vm0 = vmmov 0   ;;  %v1051_v24 = vld [vmem:[%s1305_s2 + $0x18] ss:$12 sps:$4 sm:$0xff]  }
  0x13   : > { %251 = vadd.xlane.f32.xlu0 %v250_v9  ;;  %459 = vmatprep.mubr.bf16.mxu0 %v1082_v23  ;;  %v1052_v25 = vld [vmem:[%s1305_s2 + $0x20] ss:$12 sps:$4 sm:$0xff]   ;;  %v1053_v26 = vld [vmem:[%s1305_s2 + $0x4] ss:$12 sps:$4 sm:$0xff]   ;;  %v1056_v28 = vld [vmem:[%s1305_s2 + $0x8] ss:$12 sps:$4 sm:$0xff]  }
  0x14   : > { %975 = vmatprep.mubr.msk.bf16.mxu1 %vm1083_vm0, %v1081_v1  ;;  %v1055_v27 = vld [vmem:[%s1305_s2] ss:$12 sps:$4 sm:$0xff]   ;;  %v1230_v38 = vand.u32 127, %v510_v37  ;;  %v1232_v39 = vshrl.u32 %v510_v37, 7  ;;  %vm565_vm2 = vcmask 257024  }
  0x15   : > { %432 = vmatpush1.bf16.msra.mxu0 %v1035_v11  ;;  %964 = vmatpush3.bf16.msra.mxu1 %v1036_v12  ;;  %v900_v33 = vld [vmem:[%s1304_s1] ss:$0 sm:$0xff] }
  0x16   : > { %965 = vmatprep.subr.bf16.mxu1 %v1081_v1  ;;  %433 = vmatprep.subr.bf16.mxu0 %v1037_v13  ;;  %vm627_vm1 = vcmp.le.s32.totalorder %v1230_v38, %v1232_v39  ;;  %v512_v49 = vadd.s32 128, %v1230_v38  ;;  %vm543_vm3 = vcmp.lt.s32.totalorder %v1230_v38, 112  ;;  %v517_v51 = vand.u32 31, %v1230_v38  ;;  %v508_v57 = vld [vmem:[%s1307_s4] sm:$0xff] }
  0x17   : > { %vm550_vm4 = vcmp.lt.s32.totalorder %v1230_v38, 16  ;;  %v509_v60 = vld [vmem:[%s1308_s5] sm:$0xff] }
  0x18   : > { %v524_v52 = vand.u32 31, %v512_v49  ;;  %vm537_vm5 = vcmp.lt.s32.totalorder %v517_v51, 16 }
  0x19   : > { %434 = vmatpush1.bf16.msra.mxu0 %v1039_v14  ;;  %966 = vmatpush3.bf16.msra.mxu1 %v1040_v15 }
  0x1a   : > { %435 = vmatprep.subr.bf16.mxu0 %v1041_v16  ;;  %967 = vmatprep.subr.bf16.mxu1 %v1081_v1  ;;  %vm538_vm6 = vcmp.lt.s32.totalorder %v524_v52, 16 }
  0x1d   : > { %436 = vmatpush1.bf16.msra.mxu0 %v1043_v17  ;;  %968 = vmatpush3.bf16.msra.mxu1 %v1044_v18 }
  0x1e   : > { %437 = vmatprep.subr.bf16.mxu0 %v1045_v19  ;;  %969 = vmatprep.subr.bf16.mxu1 %v1081_v1 }
  0x21   : > { %438 = vmatpush1.bf16.msra.mxu0 %v1047_v20  ;;  %970 = vmatpush3.bf16.msra.mxu1 %v1048_v21 }
  0x22   : > { %439 = vmatprep.subr.bf16.mxu0 %v1049_v22  ;;  %971 = vmatprep.subr.bf16.mxu1 %v1081_v1 }
  0x25   : > { %440 = vmatpush1.bf16.msra.mxu0 %v1051_v24  ;;  %972 = vmatpush3.bf16.msra.mxu1 %v1052_v25 }
  0x26   : > { %441 = vmatprep.subr.bf16.mxu0 %v1053_v26  ;;  %973 = vmatprep.subr.bf16.mxu1 %v1081_v1 }
  0x29   : > { %442 = vmatpush1.bf16.msra.mxu0 %v1055_v27  ;;  %974 = vmatpush3.bf16.msra.mxu1 %v1056_v28 }
  0x9c   : > { %v252_v29 = vpop.xlane.xlu0 %251 }
  0x9d   : > { %v254_v30 = vmul.f32 0.0078125, %v252_v29 }
  0x9f   : > { %v255_v31 = vadd.f32 1e-06, %v254_v30 }
  0xa1   : > { %1057 = vrsqrt.f32 %v255_v31 }
  0xae   : > { %v1058_v32 = vpop.eup %1057 }
  0xaf   : > { %v257_v34 = vmul.f32 %v1058_v32, %v249_v8 }
  0xb1   : > { %v265_v35 = vmul.f32 %v900_v33, %v257_v34 }
  0xb3   : > { %v266_v36 = vpack.c.bf16 %v265_v35, %v265_v35 }
  0xb5   : > { %460 = vmatmul.mubr.bf16.vlgmr.msra.gmra.mxu0 %v266_v36  ;;  %976 = vmatmul.mubr.bf16.vlgmr.msra.gmra.mxu1 %v266_v36 }
 0x175   : > { %v461_v40 = vpop.f32.mrf.mxu0  ;;  %v502_v41 = vpop.f32.mrf.mxu1 }
 0x176   : > { %v568_v42 = vpack.c.bf16 %v502_v41, %v502_v41  ;;  %546 = vrot.lane.b32.xlu1 %v461_v40, %s1084_s12  ;;  %539 = vrot.lane.b32.xlu0 %v461_v40, %s1085_s13  ;;  %v553_v2 = vmul.f32 %v508_v57, %v461_v40 }
 0x177   : > { %v463_v43 = vpop.f32.mrf.mxu0  ;;  %v977_v44 = vpop.f32.mrf.mxu1 }
 0x178   : > { %569 = vst.msk [vmem:[#allocation4] sm:$0xf] %vm565_vm2, %v568_v42  ;;  %v554_v3 = vmul.f32 %v508_v57, %v463_v43 }
 0x179   : > { %v465_v45 = vpop.f32.mrf.mxu0  ;;  %v505_v46 = vpop.f32.mrf.mxu1 }
 0x17a   : > { %541 = vrot.lane.b32.xlu1 %v463_v43, %s1085_s13 }
 0x17b   : > { %v466_v47 = vpop.f32.mrf.mxu0  ;;  %v978_v48 = vpop.f32.mrf.mxu1 }
 0x17e   : > { %548 = vrot.lane.b32.xlu1 %v463_v43, %s1084_s12 }
 0x182   : > { %589 = vrot.lane.b32.xlu1 %v568_v42, %s1086_s15 }
 0x186   : > { %604 = vrot.lane.b32.xlu1 %v568_v42, %s1087_s16 }
 0x1e8   : > { %v547_v50 = vpop.permute.xlu1 %546  ;;  %v540_v53 = vpop.permute.xlu0 %539 }
 0x1ec   : > { %v542_v54 = vpop.permute.xlu1 %541 }
 0x1ed   : > { %v544_v55 = vsel %vm543_vm3, %v540_v53, %v542_v54  ;;  %v545_v56 = vsel %vm543_vm3, %v542_v54, %v540_v53 }
 0x1ee   : > { %v555_v58 = vsub.f32 0.0, %v544_v55  ;;  %v556_v59 = vsub.f32 0.0, %v545_v56 }
 0x1f0   : > { %v549_v61 = vpop.permute.xlu1 %548 }
 0x1f1   : > { %v551_v62 = vsel %vm550_vm4, %v547_v50, %v549_v61  ;;  %v552_v63 = vsel %vm550_vm4, %v549_v61, %v547_v50 }
 0x1f2   : > { %v557_v0 = vsel %vm537_vm5, %v555_v58, %v552_v63  ;;  %v558_v1 = vsel %vm538_vm6, %v556_v59, %v551_v62 }
 0x1f3   : > { %v559_v4 = vmul.f32 %v557_v0, %v509_v60  ;;  %v560_v5 = vmul.f32 %v558_v1, %v509_v60 }
 0x1f4   : > { %v590_v6 = vpop.permute.xlu1 %589 }
 0x1f5   : > { %v561_v7 = vadd.f32 %v559_v4, %v553_v2  ;;  %v562_v8 = vadd.f32 %v560_v5, %v554_v3  ;;  %593 = vst.msk [vmem:[#allocation4 + $0x4] sm:$0xf] %vm565_vm2, %v590_v6 }
 0x1f7   : > { %v563_v9 = vpack.c.bf16 %v561_v7, %v561_v7  ;;  %v564_v10 = vpack.c.bf16 %v562_v8, %v562_v8 }
 0x1f8   : > { %v605_v11 = vpop.permute.xlu1 %604 }
 0x1f9   : > { %608 = vst.msk [vmem:[#allocation4 + $0x8] sm:$0xf] %vm565_vm2, %v605_v11  ;;  %573 = vrot.lane.b32.xlu1 %v563_v9, %s1086_s15  ;;  %566 = vst.msk [vmem:[#allocation2] sm:$0xf] %vm565_vm2, %v563_v9  ;;  %599 = vrot.lane.b32.xlu0 %v564_v10, %s1087_s16 }
 0x1fa   : > { %567 = vst.msk [vmem:[#allocation3] sm:$0xf] %vm565_vm2, %v564_v10 }
 0x1fd   : > { %609 = vrot.lane.b32.xlu0 %v563_v9, %s1088_s23  ;;  %581 = vrot.lane.b32.xlu1 %v564_v10, %s1086_s15 }
 0x201   : > { %619 = vrot.lane.b32.xlu0 %v568_v42, %s1088_s23  ;;  %594 = vrot.lane.b32.xlu1 %v563_v9, %s1087_s16 }
 0x205   : > { %614 = vrot.lane.b32.xlu1 %v564_v10, %s1088_s23 }
 0x26b   : > { %v574_v12 = vpop.permute.xlu1 %573  ;;  %v600_v13 = vpop.permute.xlu0 %599 }
 0x26c   : > { %577 = vst.msk [vmem:[#allocation2 + $0x4] sm:$0xf] %vm565_vm2, %v574_v12  ;;  %603 = vst.msk [vmem:[#allocation3 + $0x8] sm:$0xf] %vm565_vm2, %v600_v13 }
 0x26f   : > { %v610_v14 = vpop.permute.xlu0 %609  ;;  %v582_v15 = vpop.permute.xlu1 %581 }
 0x270   : > { %613 = vst.msk [vmem:[#allocation2 + $0xc] sm:$0xf] %vm565_vm2, %v610_v14  ;;  %585 = vst.msk [vmem:[#allocation3 + $0x4] sm:$0xf] %vm565_vm2, %v582_v15 }
 0x273   : > { %v620_v16 = vpop.permute.xlu0 %619  ;;  %v595_v17 = vpop.permute.xlu1 %594 }
 0x274   : > { %623 = vst.msk [vmem:[#allocation4 + $0xc] sm:$0xf] %vm565_vm2, %v620_v16  ;;  %598 = vst.msk [vmem:[#allocation2 + $0x8] sm:$0xf] %vm565_vm2, %v595_v17 }
 0x277   : > { %v615_v18 = vpop.permute.xlu1 %614 }
 0x278   : > { %618 = vst.msk [vmem:[#allocation3 + $0xc] sm:$0xf] %vm565_vm2, %v615_v18 }
 0x279 LB: >> { %v1089_v19 = vmov 0.0   ;;  %vm1090_vm7 = vmmov 0   ;;  %s1271_s25 = sshll.u32 %s1079_s24, 2  ;;  %vm640_vm8 = vcmask 261120   ;;  %s933_s26 = sshll.u32 %s1079_s24, 5  ;;  %vm689_vm9 = vcmask 64512   ;;  %s1079_s24 = sphi %s1264_s24, %s633_s24  }
 0x27a   : >> { %979 = vmatprep.subr.bf16.mxu0 %v1089_v19  ;;  %981 = vmatprep.mubr.msk.bf16.mxu0 %vm1090_vm7, %v1089_v19  ;;  %s754_s27 = sshra.s32 %s933_s26, 3  ;;  %s638_s28 = scalar_lea.vmem [#allocation3], %s1271_s25  ;;  %vm709_vm10 = vcmask 1043456   ;;  %v762_v50 = vld [vmem:[#allocation5] sm:$0xff] }
 0x27b   : >> { %985 = vmatprep.subr.bf16.mxu1 %v1089_v19  ;;  %987 = vmatprep.mubr.msk.bf16.mxu1 %vm1090_vm7, %v1089_v19  ;;  %s934_s29 = sshll.u32 %s754_s27, 2  ;;  %s635_s9 = scalar_lea.vmem [#allocation2], %s1271_s25 }
 0x27c   : >> { %s1280_s8 = scalar_lea.vmem %s1306_s3, %s934_s29  ;;  %v636_v22 = vld [vmem:[%s635_s9] sm:$0xf]  ;;  %s704_s10 = scalar_lea.vmem [#allocation4], %s1271_s25 }
 0x27d   : >> { %v705_v35 = vld [vmem:[%s704_s10] sm:$0xf]  ;;  %v1059_v42 = vld [vmem:[%s1280_s8 + $0x8] sm:$0xff]   ;;  %s633_s24 = sadd.s32 1, %s1079_s24  }
 0x27e   : >> { %v711_v36 = vsel %vm709_vm10, %v705_v35, 0  ;;  %v1060_v44 = vld [vmem:[%s1280_s8] sm:$0xff]   ;;  %p630_p4 = scmp.ge.s32.totalorder %s633_s24, 4  }
 0x27f   : >> { %v639_v20 = vld [vmem:[%s638_s28] sm:$0xf]  ;;  %986 = vmatpush3.bf16.msra.mxu1 %v711_v36 }
 0x280   : >> { %v645_v21 = vsel %vm640_vm8, %v639_v20, 0  ;;  %991 = vmatprep.subr.bf16.mxu1 %v1089_v19  ;;  %v821_v56 = vld [vmem:[%s1157_s14] sm:$0xf] (%p630_p4) }
 0x281   : >> { %980 = vmatpush3.bf16.xpose.msra.mxu0 %v645_v21  ;;  %v822_v58 = vunpack.c.l.bf16 (%p630_p4), %v821_v56 }
 0x288   : >> { %982 = vmatmul.mubr.msk.bf16.vlgmr.msra.gmra.mxu0 %vm640_vm8, %v636_v22 }
 0x348   : >> { %v681_v23 = vpop.f32.mrf.mxu0 }
 0x349   : >> { %v687_v24 = vmul.f32 0.17677669, %v681_v23 }
 0x34a   : >> { %v983_v25 = vpop.f32.mrf.mxu0 }
 0x34b   : >> { %v688_v26 = vsel %vm627_vm1, %v687_v24, -1e+30 }
 0x34c   : >> { %v684_v27 = vpop.f32.mrf.mxu0  ;;  %v690_v28 = vsel %vm689_vm9, %v688_v26, -inf }
 0x34d   : >> { %691 = vmax.xlane.f32.xlu0 %v690_v28 }
 0x34e   : >> { %v984_v29 = vpop.f32.mrf.mxu0 }
 0x3d6   : >> { %v692_v30 = vpop.xlane.xlu0 %691 }
 0x3d7   : >> { %v693_v31 = vsub.f32 %v688_v26, %v692_v30 }
 0x3d9   : >> { %v694_v32 = vmul.f32 1.442695, %v693_v31 }
 0x3db   : >> { %1061 = vpow2.f32 %v694_v32 }
 0x3e8   : >> { %v1062_v33 = vpop.eup %1061 }
 0x3e9   : >> { %v696_v34 = vsel %vm689_vm9, %v1062_v33, 0.0 }
 0x3ea   : >> { %697 = vadd.xlane.f32.xlu0 %v696_v34 }
 0x473   : >> { %v698_v37 = vpop.xlane.xlu0 %697 }
 0x474   : >> { %1063 = vrcp.f32 %v698_v37 }
 0x481   : >> { %v1064_v40 = vpop.eup %1063 }
 0x482   : >> { %v701_v41 = vmul.f32 %v1064_v40, %v1062_v33 }
 0x484   : >> { %v702_v43 = vpack.c.bf16 %v701_v41, %v701_v41 }
 0x486   : >> { %988 = vmatmul.mubr.msk.bf16.vlgmr.msra.gmra.mxu1 %vm689_vm9, %v702_v43 }
 0x487   : >> { %992 = vmatpush3.bf16.msra.mxu1 %v1059_v42  ;;  %995 = vmatprep.mubr.msk.bf16.mxu1 %vm1090_vm7, %v1089_v19 }
 0x488   : >> { %993 = vmatprep.subr.bf16.mxu1 %v1089_v19 }
 0x48b   : >> { %994 = vmatpush3.bf16.msra.mxu1 %v1060_v44 }
 0x546   : >> { %v747_v45 = vpop.f32.mrf.mxu1 }
 0x547   : >> { %v763_v46 = vpack.c.bf16 %v747_v45, %v747_v45 }
 0x548   : >> { %v989_v47 = vpop.f32.mrf.mxu1 }
 0x549   : >> { %996 = vmatmul.mubr.msk.bf16.vlgmr.msra.gmra.mxu1 %vm640_vm8, %v763_v46 }
 0x54a   : >> { %v750_v48 = vpop.f32.mrf.mxu1 }
 0x54c   : >> { %v990_v49 = vpop.f32.mrf.mxu1 }
 0x609   : >> { %v813_v51 = vpop.f32.mrf.mxu1 }
 0x60a   : >> { %v819_v52 = vadd.f32 %v813_v51, %v762_v50 }
 0x60b   : >> { %v997_v53 = vpop.f32.mrf.mxu1 }
 0x60c   : >> { %820 = vst [vmem:[#allocation5] sm:$0xff] %v819_v52 }
 0x60d   : >> { %v816_v54 = vpop.f32.mrf.mxu1 }
 0x60f   : >> { %v998_v55 = vpop.f32.mrf.mxu1 }
 0x610   : > { %632 = sbr.rel (!%p630_p4) target bundleno = 633 (0x279), region = 94 }
 0x613   : > { %v823_v57 = vld [vmem:[#allocation5] sm:$0xff] (%p630_p4) }
 0x614   : > { %v824_v59 = vadd.f32 (%p630_p4), %v823_v57, %v822_v58 }
 0x616   : > { %v825_v60 = vpack.c.bf16 %v824_v59, %v824_v59 }
 0x618   : > { %826 = vst [vmem:[%s1162_s17] sm:$0xf] %v825_v60 }
 0x619 PF: > { %s16_s21 = sadd.s32 1, %s1075_s21  }
 0x61a   : > { %p13_p5 = scmp.ge.s32.totalorder %s16_s21, 4  }
 0x61c   :  { %15 = sbr.rel (!%p13_p5) target bundleno = 1 (0x1), region = 105 }

// kernel: llama_forward.9
= control target key start
LH: loop header
LB: loop body
LE: loop exit
PB: predicated region body
PF: predicated region fallthrough
CT: control target
= control target key end

     0   :  { %10 = vsyncpa [#allocation4], 0  ;;  %s720_s0 = inlined_call_operand.vmem [shape: bf16[16,128], index: 0, kind: input, shape index: {}]   ;;  %s721_s1 = inlined_call_operand.vmem [shape: f32[1,128], index: 1, kind: input, shape index: {}]   ;;  %s722_s2 = inlined_call_operand.vmem [shape: bf16[128,512], index: 2, kind: input, shape index: {}]   ;;  %s723_s3 = inlined_call_operand.hbm [shape: bf16[16,512], index: 3, kind: output, shape index: {0}]   ;;  %s724_s4 = inlined_call_operand.hbm [shape: bf16[16,128], index: 4, kind: output, shape index: {1}]  }
   0x1   :  { %v458_v0 = vld [vmem:[%s720_s0] sm:$0xff]  }
   0x2   :  { %v605_v1 = vunpack.c.l.bf16 %v458_v0  ;;  %v607_v2 = vunpack.c.h.bf16 %v458_v0 }
   0x4   :  { %v27_v3 = vmul.f32 %v605_v1, %v605_v1  ;;  %v28_v4 = vmul.f32 %v607_v2, %v607_v2 }
   0x6   :  { %29 = vadd.xlane.f32.xlu0 %v27_v3 }
   0xa   :  { %31 = vadd.xlane.f32.xlu0 %v28_v4 }
   0xb   :  { %11 = vsyncpa [#allocation6], 0  ;;  %v473_v5 = vld [vmem:[%s722_s2 + $0xe4] ss:$16 sps:$4 sm:$0xff]   ;;  %v475_v6 = vld [vmem:[%s722_s2 + $0xec] ss:$16 sps:$4 sm:$0xff]  }
   0xc   :  { %v477_v7 = vld [vmem:[%s722_s2 + $0xe0] ss:$16 sps:$4 sm:$0xff]   ;;  %v478_v8 = vld [vmem:[%s722_s2 + $0xe8] ss:$16 sps:$4 sm:$0xff]   ;;  %265 = vmatprep.subr.bf16.mxu0 %v473_v5  ;;  %308 = vmatprep.subr.bf16.mxu1 %v475_v6  ;;  %v479_v9 = vld [vmem:[%s722_s2 + $0xc4] ss:$16 sps:$4 sm:$0xff]  }
   0xd   :  { %266 = vmatpush1.bf16.msra.mxu0 %v477_v7  ;;  %309 = vmatpush1.bf16.msra.mxu1 %v478_v8  ;;  %v481_v10 = vld [vmem:[%s722_s2 + $0xcc] ss:$16 sps:$4 sm:$0xff]   ;;  %v483_v11 = vld [vmem:[%s722_s2 + $0xc0] ss:$16 sps:$4 sm:$0xff]   ;;  %v484_v12 = vld [vmem:[%s722_s2 + $0xc8] ss:$16 sps:$4 sm:$0xff]  }
   0xe   :  { %267 = vmatprep.subr.bf16.mxu0 %v479_v9  ;;  %310 = vmatprep.subr.bf16.mxu1 %v481_v10  ;;  %v485_v13 = vld [vmem:[%s722_s2 + $0xa4] ss:$16 sps:$4 sm:$0xff]   ;;  %v487_v14 = vld [vmem:[%s722_s2 + $0xac] ss:$16 sps:$4 sm:$0xff]   ;;  %v489_v15 = vld [vmem:[%s722_s2 + $0xa0] ss:$16 sps:$4 sm:$0xff]  }
   0xf   :  { %v490_v16 = vld [vmem:[%s722_s2 + $0xa8] ss:$16 sps:$4 sm:$0xff]   ;;  %v491_v17 = vld [vmem:[%s722_s2 + $0x84] ss:$16 sps:$4 sm:$0xff]   ;;  %v493_v18 = vld [vmem:[%s722_s2 + $0x8c] ss:$16 sps:$4 sm:$0xff]  }
  0x10   :  { %v495_v19 = vld [vmem:[%s722_s2 + $0x80] ss:$16 sps:$4 sm:$0xff]   ;;  %v496_v20 = vld [vmem:[%s722_s2 + $0x88] ss:$16 sps:$4 sm:$0xff]   ;;  %v497_v21 = vld [vmem:[%s722_s2 + $0x64] ss:$16 sps:$4 sm:$0xff]  }
  0x11   :  { %268 = vmatpush1.bf16.msra.mxu0 %v483_v11  ;;  %311 = vmatpush1.bf16.msra.mxu1 %v484_v12  ;;  %v499_v22 = vld [vmem:[%s722_s2 + $0x6c] ss:$16 sps:$4 sm:$0xff]   ;;  %v501_v23 = vld [vmem:[%s722_s2 + $0x60] ss:$16 sps:$4 sm:$0xff]   ;;  %v502_v24 = vld [vmem:[%s722_s2 + $0x68] ss:$16 sps:$4 sm:$0xff]  }
  0x12   :  { %269 = vmatprep.subr.bf16.mxu0 %v485_v13  ;;  %312 = vmatprep.subr.bf16.mxu1 %v487_v14  ;;  %v503_v25 = vld [vmem:[%s722_s2 + $0x44] ss:$16 sps:$4 sm:$0xff]   ;;  %v505_v26 = vld [vmem:[%s722_s2 + $0x4c] ss:$16 sps:$4 sm:$0xff]   ;;  %v507_v27 = vld [vmem:[%s722_s2 + $0x40] ss:$16 sps:$4 sm:$0xff]  }
  0x13   :  { %v508_v28 = vld [vmem:[%s722_s2 + $0x48] ss:$16 sps:$4 sm:$0xff]   ;;  %v509_v29 = vld [vmem:[%s722_s2 + $0x24] ss:$16 sps:$4 sm:$0xff]   ;;  %v511_v30 = vld [vmem:[%s722_s2 + $0x2c] ss:$16 sps:$4 sm:$0xff]  }
  0x14   :  { %v513_v31 = vld [vmem:[%s722_s2 + $0x20] ss:$16 sps:$4 sm:$0xff]   ;;  %v514_v32 = vld [vmem:[%s722_s2 + $0x28] ss:$16 sps:$4 sm:$0xff]   ;;  %v515_v33 = vld [vmem:[%s722_s2 + $0x4] ss:$16 sps:$4 sm:$0xff]  }
  0x15   :  { %270 = vmatpush1.bf16.msra.mxu0 %v489_v15  ;;  %313 = vmatpush1.bf16.msra.mxu1 %v490_v16  ;;  %v517_v34 = vld [vmem:[%s722_s2 + $0xc] ss:$16 sps:$4 sm:$0xff]   ;;  %v519_v35 = vld [vmem:[%s722_s2] ss:$16 sps:$4 sm:$0xff]   ;;  %v520_v36 = vld [vmem:[%s722_s2 + $0x8] ss:$16 sps:$4 sm:$0xff]  }
  0x16   :  { %271 = vmatprep.subr.bf16.mxu0 %v491_v17  ;;  %314 = vmatprep.subr.bf16.mxu1 %v493_v18  ;;  %v570_v37 = vmov 0   ;;  %v411_v47 = vld [vmem:[%s721_s1] ss:$0 sm:$0xff]  ;;  %s571_s27 = smov [#allocation5]  }
  0x17   :  { %297 = vmatprep.mubr.bf16.mxu0 %v570_v37  ;;  %340 = vmatprep.mubr.bf16.mxu1 %v570_v37  ;;  %s396_s28 = sshll.u32 %s571_s27, 4  ;;  %s397_s28 = int_to_ptr.vmem [resolvable:$true] %s396_s28 }
  0x18   :  { %s526_s29 = scalar_lea.vmem %s397_s28, 128  ;;  %p531_p1 = scmp.lt.s32.totalorder %s397_s28, %s397_s28 }
  0x19   :  { %272 = vmatpush1.bf16.msra.mxu0 %v495_v19  ;;  %315 = vmatpush1.bf16.msra.mxu1 %v496_v20  ;;  %p527_p0 = scmp.ne.s32.totalorder %s397_s28, %s526_s29  ;;  %p532_p2 = scmp.lt.s32.totalorder %s526_s29, %s526_s29 }
  0x1a   :  { %273 = vmatprep.subr.bf16.mxu0 %v497_v21  ;;  %316 = vmatprep.subr.bf16.mxu1 %v499_v22 }
  0x1b   :  { %p533_p3 = por %p532_p2, %p531_p1 }
  0x1d   :  { %274 = vmatpush1.bf16.msra.mxu0 %v501_v23  ;;  %317 = vmatpush1.bf16.msra.mxu1 %v502_v24  ;;  %p534_p4 = pnand %p533_p3, %p527_p0 }
  0x1e   :  { %275 = vmatprep.subr.bf16.mxu0 %v503_v25  ;;  %318 = vmatprep.subr.bf16.mxu1 %v505_v26 }
  0x21   :  { %276 = vmatpush1.bf16.msra.mxu0 %v507_v27  ;;  %319 = vmatpush1.bf16.msra.mxu1 %v508_v28 }
  0x22   :  { %277 = vmatprep.subr.bf16.mxu0 %v509_v29  ;;  %320 = vmatprep.subr.bf16.mxu1 %v511_v30 }
  0x25   :  { %278 = vmatpush1.bf16.msra.mxu0 %v513_v31  ;;  %321 = vmatpush1.bf16.msra.mxu1 %v514_v32 }
  0x26   :  { %279 = vmatprep.subr.bf16.mxu0 %v515_v33  ;;  %322 = vmatprep.subr.bf16.mxu1 %v517_v34 }
  0x29   :  { %280 = vmatpush1.bf16.msra.mxu0 %v519_v35  ;;  %323 = vmatpush1.bf16.msra.mxu1 %v520_v36 }
  0x8f   :  { %v30_v38 = vpop.xlane.xlu0 %29 }
  0x90   :  { %v34_v39 = vmul.f32 0.0078125, %v30_v38 }
  0x92   :  { %v36_v40 = vadd.f32 1e-06, %v34_v39 }
  0x93   :  { %v32_v41 = vpop.xlane.xlu0 %31 }
  0x94   :  { %522 = vrsqrt.f32 %v36_v40  ;;  %v35_v42 = vmul.f32 0.0078125, %v32_v41 }
  0x96   :  { %v37_v43 = vadd.f32 1e-06, %v35_v42 }
  0x98   :  { %524 = vrsqrt.f32 %v37_v43 }
  0xa1   :  { %v523_v44 = vpop.eup %522 }
  0xa2   :  { %v40_v45 = vmul.f32 %v523_v44, %v605_v1 }
  0xa4   :  { %v49_v49 = vmul.f32 %v411_v47, %v40_v45 }
  0xa5   :  { %v525_v46 = vpop.eup %524 }
  0xa6   :  { %v41_v48 = vmul.f32 %v525_v46, %v607_v2 }
  0xa8   :  { %v50_v50 = vmul.f32 %v411_v47, %v41_v48 }
  0xaa   :  { %v464_v51 = vpack.c.bf16 %v50_v50, %v49_v49 }
  0xac   :  { %465 = vst [vmem:[#allocation2] sm:$0xff] %v464_v51  }
  0xb3   :  { %v521_v52 = vld [vmem:[#allocation2] sm:$0xff]  }
  0xb4   :  { %v61_v53 = vld [vmem:[#allocation2] sm:$0xff]   ;;  %298 = vmatmul.mubr.bf16.vlgmr.msra.gmra.mxu0 %v521_v52  ;;  %341 = vmatmul.mubr.bf16.vlgmr.msra.gmra.mxu1 %v521_v52 }
  0xb5   :  { %63 = vst [vmem:[#allocation5] sm:$0xff] %v61_v53  }
  0xb6   :  { %537 = shalt.err (!%p534_p4)
}
  0xb7   :  { %s572_s1 = smov 64   ;;  %s573_s30 = smov 4  }
  0xb8   :  { %402 = dma.vmem_to_hbm [thread:$0]  %s397_s28, 128, %s724_s4, [#allocation6], %s572_s1, %s572_s1, %s573_s30  }
  0xb9   :  { %s574_s7 = smov [#allocation3]  }
  0xba   :  { %s384_s8 = sshll.u32 %s574_s7, 4  ;;  %s385_s8 = int_to_ptr.vmem [resolvable:$true] %s384_s8 }
  0xbb   :  { %s546_s4 = scalar_lea.vmem %s385_s8, 512  ;;  %p551_p6 = scmp.lt.s32.totalorder %s385_s8, %s385_s8 }
  0xbc   :  { %p547_p5 = scmp.ne.s32.totalorder %s385_s8, %s546_s4  ;;  %p552_p7 = scmp.lt.s32.totalorder %s546_s4, %s546_s4 }
  0xbe   :  { %p553_p8 = por %p552_p7, %p551_p6 }
  0xc0   :  { %p554_p9 = pnand %p553_p8, %p547_p5 }
 0x174   :  { %v299_v54 = vpop.f32.mrf.mxu0  ;;  %v342_v55 = vpop.f32.mrf.mxu1 }
 0x176   :  { %v301_v56 = vpop.f32.mrf.mxu0  ;;  %v344_v57 = vpop.f32.mrf.mxu1 }
 0x177   :  { %v453_v58 = vpack.c.bf16 %v301_v56, %v299_v54  ;;  %v454_v59 = vpack.c.bf16 %v344_v57, %v342_v55 }
 0x178   :  { %v303_v60 = vpop.f32.mrf.mxu0  ;;  %v346_v61 = vpop.f32.mrf.mxu1 }
 0x179   :  { %375 = vst [vmem:[#allocation3] sm:$0xff] %v453_v58  ;;  %376 = vst [vmem:[#allocation3 + $0x8] sm:$0xff] %v454_v59 }
 0x17a   :  { %v305_v62 = vpop.f32.mrf.mxu0  ;;  %v348_v63 = vpop.f32.mrf.mxu1 }
 0x17b   :  { %v455_v0 = vpack.c.bf16 %v305_v62, %v303_v60  ;;  %v456_v1 = vpack.c.bf16 %v348_v63, %v346_v61 }
 0x17d   :  { %377 = vst [vmem:[#allocation3 + $0x10] sm:$0xff] %v455_v0  ;;  %378 = vst [vmem:[#allocation3 + $0x18] sm:$0xff] %v456_v1 }
 0x17e   :  { %557 = shalt.err (!%p554_p9)
}
 0x17f   :  { %s575_s9 = smov 256   ;;  %s576_s10 = smov 16  }
 0x180   :  { %390 = dma.vmem_to_hbm [thread:$0]  %s385_s8, 512, %s723_s3, [#allocation4], %s575_s9, %s575_s9, %s576_s10  }
 0x181   :  { %566 = dma.done.wait [#allocation4], 512  }
 0x182   :  { %567 = vsyncadd [#allocation4], 4294966784 }
 0x183   :  { %568 = dma.done.wait [#allocation6], 128  }
 0x184   :  { %569 = vsyncadd [#allocation6], 4294967168 }
 0x185   :  { %409 = vsyncpa [#allocation4], 1 }
 0x186   :  { %410 = vsyncpa [#allocation6], 1 }

</bundles_post_ra>
